<compile_context>
chip_gen: v5e
topology: v5e:2x2
jax: 0.10.0
libtpu: 0.0.40
codegen_flags: <defaults>
</compile_context>

<pallas_src>
import functools

import jax
import jax.numpy as jnp
from jax import lax
from jax.experimental import pallas as pl
from jax.experimental.pallas import tpu as pltpu


# ----------------------------------------------------------------------------
# Generation-aware configuration (VMEM limit + exp dtype).
# ----------------------------------------------------------------------------
def _tpu_config():
    kind = ""
    try:
        kind = jax.devices()[0].device_kind.lower()
    except Exception:
        pass
    is_v7 = ("v7" in kind) or ("tpu7" in kind)
    is_v6 = "v6" in kind
    if is_v7:
        vmem_limit = 44 * 1024 * 1024            # 64 MiB physical per TC
    elif is_v6 or ("v5" in kind) or ("v4" in kind):
        vmem_limit = 64 * 1024 * 1024            # 128 MiB physical
    else:
        vmem_limit = 32 * 1024 * 1024            # conservative fallback
    try:
        cap = int(pltpu.get_tpu_info().vmem_capacity_bytes)
        vmem_limit = min(vmem_limit, max(16 * 1024 * 1024, int(0.7 * cap)))
    except Exception:
        pass
    # bf16 exp only where VPU/EUP have a bf16 path (v6e / v7x).
    exp_dtype = jnp.bfloat16 if (is_v6 or is_v7) else jnp.float32
    return vmem_limit, exp_dtype


def _pick_tile(S, K, M, D, C, vmem_limit):
    """Largest S-tile (multiple of 8, dividing S) that fits a VMEM byte budget."""
    cin, c2 = 3 + D, 2 * C

    def need(ts):
        dbuf = 2 * (ts * K * cin * 2 + ts * cin * 2 + M * c2 * 4 + ts * C * 4)
        wts = 3 * cin * c2 * 2 + 2 * c2 * 4
        live = 3 * ts * (K + M) * c2 * 4          # pre/h/e f32 intermediates
        return dbuf + wts + live

    cands = {t for t in range(8, 257, 8) if t <= S and S % t == 0}
    if S <= 256:
        cands.add(S)
    cands = sorted(cands) if cands else [S]
    budget = int(0.6 * vmem_limit)
    ts = cands[0]
    for t in cands:
        if need(t) <= budget:
            ts = t
    return ts


# ----------------------------------------------------------------------------
# Kernel A: global (SPA) branch, per batch element.
#   soft     = softmax(z @ fi^T, -1)
#   global_p = soft @ new_p
#   g_kern   = exp(-gamma * cdist(global_p, new_p)^2)
#   global_f = (soft * g_kern) @ fi
#   T_m      = global_p @ Wp_g + global_f @ (Wf_g + Wdf_g)   (main|attn fused)
# Only T_m (B, M, 2C) is written out (lane-dense).
# ----------------------------------------------------------------------------
def _global_kernel(fi_ref, np_ref, pT_ref, z_ref, wp_ref, wgf_ref,
                   tm_ref, *, gamma):
    fi = fi_ref[0]                                 # (S, D) bf16
    pnt = np_ref[0]                                # (S, 3) f32
    pT = pT_ref[0]                                 # (3, S) f32

    # interpolation map + softmax over S (fi.T folds into the contraction)
    s = jnp.dot(z_ref[...], fi.T, preferred_element_type=jnp.float32)   # (M, S)
    s = s - jnp.max(s, axis=-1, keepdims=True)
    e = jnp.exp(s)
    soft = e * pl.reciprocal(jnp.sum(e, axis=-1, keepdims=True), approx=True)

    gp = jnp.dot(soft, pnt, preferred_element_type=jnp.float32)          # (M, 3)

    # squared distance via |a|^2 + |b|^2 - 2ab (clamped), lane-dense
    gp2 = jnp.sum(gp * gp, axis=-1, keepdims=True)                       # (M, 1)
    p2 = jnp.sum(pT * pT, axis=0, keepdims=True)                         # (1, S)
    cross = jnp.dot(gp, pT, preferred_element_type=jnp.float32)          # (M, S)
    d2 = jnp.maximum(gp2 + p2 - 2.0 * cross, 0.0)
    gk = jnp.exp(-gamma * d2)

    attn = (soft * gk).astype(fi.dtype)
    gf = jnp.dot(attn, fi, preferred_element_type=jnp.float32)           # (M, D)

    tm_ref[0] = (jnp.dot(gp, wp_ref[...], preferred_element_type=jnp.float32)
                 + jnp.dot(gf, wgf_ref[...], preferred_element_type=jnp.float32))


def global_term(fi, new_p, pT, z, wp_g, wgf_g, *, gamma, vmem_limit):
    """fi:(B,S,D) new_p:(B,S,3) pT:(B,3,S) z:(M,D) -> T_m (B, M, 2C)."""
    B, S, D = fi.shape
    M = z.shape[0]
    C2 = wp_g.shape[1]
    kernel = functools.partial(_global_kernel, gamma=float(gamma))
    return pl.pallas_call(
        kernel,
        out_shape=jax.ShapeDtypeStruct((B, M, C2), jnp.float32),
        grid=(B,),
        in_specs=[
            pl.BlockSpec((1, S, D), lambda b: (b, 0, 0)),
            pl.BlockSpec((1, S, 3), lambda b: (b, 0, 0)),
            pl.BlockSpec((1, 3, S), lambda b: (b, 0, 0)),
            pl.BlockSpec((M, D), lambda b: (0, 0)),
            pl.BlockSpec((3, C2), lambda b: (0, 0)),
            pl.BlockSpec((D, C2), lambda b: (0, 0)),
        ],
        out_specs=pl.BlockSpec((1, M, C2), lambda b: (b, 0, 0)),
        compiler_params=pltpu.CompilerParams(
            dimension_semantics=("parallel",),
            vmem_limit_bytes=vmem_limit),
    )(fi, new_p, pT, z, wp_g, wgf_g)


# ----------------------------------------------------------------------------
# Kernel B: fused local LPA + global combine, per (batch, S-tile).
#   local : pre = grouped_pf @ [Wp ; Wf+Wdf] - ([np|fi] @ [Wp ; Wdf] - b)
#   global: pre = T_m[m]                     - ([np|fi] @ [Wp_g ; Wdf_g] - b_g)
#   each path: relu on the main half, channel softmax over the group axis on
#   the attn half (1/tau folded), weighted sum over the group via
#   sum(e*h)/sum(e).  alpha / (1-alpha) are folded into the main-path weights,
#   so the two branch outputs are simply added.
# ----------------------------------------------------------------------------
def _lpa_fused_kernel(gpf_ref, npfi_ref, tm_ref,
                      wg_l_ref, wpt_l_ref, bl_ref, wpt_g_ref, bg_ref,
                      out_ref, *, cout, exp_dtype):
    TS, K, CIN = gpf_ref.shape[1], gpf_ref.shape[2], gpf_ref.shape[3]
    # K (nsample) stays a multiple of 8 so these reshapes are free.
    gpf = gpf_ref[0].reshape(TS * K, CIN)          # bf16 [grouped_p | grouped_f]
    npfi = npfi_ref[0]                             # (TS, 3+D) bf16 [new_p | fi]

    # ---------------- local branch ----------------
    grp = jnp.dot(gpf, wg_l_ref[...], preferred_element_type=jnp.float32)
    pt_l = (jnp.dot(npfi, wpt_l_ref[...], preferred_element_type=jnp.float32)
            - bl_ref[...])
    pre_l = grp.reshape(TS, K, -1) - pt_l[:, None, :]          # (TS, K, 2C)

    h_l = jnp.maximum(pre_l[..., :cout], 0.0)
    a_l = pre_l[..., cout:]
    a_l = a_l - jnp.max(a_l, axis=1, keepdims=True)
    e_l = jnp.exp(a_l.astype(exp_dtype))
    num_l = jnp.sum(e_l * h_l, axis=1)                          # f32 accumulate
    den_l = jnp.sum(e_l.astype(jnp.float32), axis=1)
    out_local = num_l * pl.reciprocal(den_l, approx=True)       # (TS, C)

    # ---------------- global branch (factored) ----------------
    pt_g = (jnp.dot(npfi, wpt_g_ref[...], preferred_element_type=jnp.float32)
            - bg_ref[...])
    pre_g = tm_ref[0][None, :, :] - pt_g[:, None, :]            # (TS, M, 2C)

    h_g = jnp.maximum(pre_g[..., :cout], 0.0)
    a_g = pre_g[..., cout:]
    a_g = a_g - jnp.max(a_g, axis=1, keepdims=True)
    e_g = jnp.exp(a_g.astype(exp_dtype))
    num_g = jnp.sum(e_g * h_g, axis=1)
    den_g = jnp.sum(e_g.astype(jnp.float32), axis=1)
    out_global = num_g * pl.reciprocal(den_g, approx=True)      # (TS, C)

    out_ref[0] = out_local + out_global


def lpa_fused(grouped_pf, npfi, tm, w_grp_l, w_pt_l, b_l, w_pt_g, b_g,
              *, cout, ts, vmem_limit, exp_dtype):
    B, S, K, CIN = grouped_pf.shape
    M = tm.shape[1]
    C2 = w_grp_l.shape[1]
    kernel = functools.partial(_lpa_fused_kernel, cout=cout, exp_dtype=exp_dtype)
    return pl.pallas_call(
        kernel,
        out_shape=jax.ShapeDtypeStruct((B, S, cout), jnp.float32),
        grid=(B, S // ts),
        in_specs=[
            pl.BlockSpec((1, ts, K, CIN), lambda b, si: (b, si, 0, 0)),
            pl.BlockSpec((1, ts, CIN), lambda b, si: (b, si, 0)),
            pl.BlockSpec((1, M, C2), lambda b, si: (b, 0, 0)),
            pl.BlockSpec((CIN, C2), lambda b, si: (0, 0)),
            pl.BlockSpec((CIN, C2), lambda b, si: (0, 0)),
            pl.BlockSpec((1, C2), lambda b, si: (0, 0)),
            pl.BlockSpec((CIN, C2), lambda b, si: (0, 0)),
            pl.BlockSpec((1, C2), lambda b, si: (0, 0)),
        ],
        out_specs=pl.BlockSpec((1, ts, cout), lambda b, si: (b, si, 0)),
        compiler_params=pltpu.CompilerParams(
            dimension_semantics=("parallel", "parallel"),
            vmem_limit_bytes=vmem_limit),
    )(grouped_pf, npfi, tm, w_grp_l, w_pt_l, b_l, w_pt_g, b_g)


# ----------------------------------------------------------------------------
# Host-side weight preparation: fold BN scale, 1/tau and sigmoid(alpha) into
# the conv weights, split into the factored [Wp | Wf+Wdf | Wdf] pieces with
# main+attn columns concatenated (2C), then vertically stack into (3+D, 2C)
# weights so the grouped / per-point terms are single MXU contractions.
# ----------------------------------------------------------------------------
def prepare_weights(params, *, d_in, tau_local, tau_delta):
    s = params['bn_scale']                       # (1, C)
    sh = params['bn_shift']                      # (1, C)
    alpha = jax.nn.sigmoid(params['alpha'])[0]   # traced scalar

    sl_p = slice(0, 3)
    sl_f = slice(3, 3 + d_in)
    sl_d = slice(3 + d_in, 3 + 2 * d_in)

    def fold(w_main, w_attn, tau, gate):
        # gate > 0, so relu(gate*x) == gate*relu(x): alpha fold is exact.
        wm = w_main * s * gate
        wa = w_attn * (s / tau)
        bm = sh * gate
        ba = sh / tau
        wp = jnp.concatenate([wm[sl_p], wa[sl_p]], axis=1)                   # (3, 2C)
        wgf = jnp.concatenate([wm[sl_f] + wm[sl_d], wa[sl_f] + wa[sl_d]], 1)  # (D, 2C)
        wdf = jnp.concatenate([wm[sl_d], wa[sl_d]], axis=1)                  # (D, 2C)
        b = jnp.concatenate([bm, ba], axis=1)                                # (1, 2C)
        return wp, wgf, wdf, b

    wp_l, wgf_l, wdf_l, b_l = fold(params['w_conv'], params['w_attn_local'],
                                   tau_local, 1.0 - alpha)
    wp_g, wgf_g, wdf_g, b_g = fold(params['w_gconv'], params['w_attn_global'],
                                   tau_delta, alpha)

    # stacked (3+D, 2C) weights -> one contraction per operand in kernel B
    w_grp_l = jnp.concatenate([wp_l, wgf_l], axis=0).astype(jnp.bfloat16)
    w_pt_l = jnp.concatenate([wp_l, wdf_l], axis=0).astype(jnp.bfloat16)
    w_pt_g = jnp.concatenate([wp_g, wdf_g], axis=0).astype(jnp.bfloat16)
    return dict(
        w_grp_l=w_grp_l, w_pt_l=w_pt_l, b_l=b_l,
        w_pt_g=w_pt_g, b_g=b_g,
        wp_g=wp_g, wgf_g=wgf_g,          # f32, used by kernel A
    )


# ----------------------------------------------------------------------------
# Glue: sampling / grouping (data-dependent gathers) in plain JAX.
# TODO(synk): at production N, replace the sequential FPS loop and the argsort
# ball query, and feed gidx via PrefetchScalarGridSpec (pf in pl.ANY + in-kernel
# DMA gather into a double-buffered VMEM scratch) so the K-times-larger grouped
# stream never round-trips through HBM — this XLA glue dominates at large N.
# ----------------------------------------------------------------------------
def furthest_point_sample(p, npoint):
    """Deterministic FPS starting at index 0 (pointnet2 semantics). (B,S) i32."""
    N = p.shape[1]

    def one(pts):
        def body(i, state):
            idxs, min_d, last = state
            d = jnp.sum((pts - pts[last]) ** 2, axis=-1)
            min_d = jnp.minimum(min_d, d)
            nxt = jnp.argmax(min_d).astype(jnp.int32)
            return idxs.at[i].set(nxt), min_d, nxt

        idxs0 = jnp.zeros((npoint,), jnp.int32)
        mind0 = jnp.full((N,), 1e10, jnp.float32)
        idxs, _, _ = lax.fori_loop(1, npoint, body, (idxs0, mind0, jnp.int32(0)))
        return idxs

    return jax.vmap(one)(p)


def ball_query(radius, nsample, p, new_p):
    """First `nsample` points within `radius`, padded with the first hit."""
    N = p.shape[1]
    d2 = jnp.sum((new_p[:, :, None, :] - p[:, None, :, :]) ** 2, axis=-1)
    mask = d2 < radius * radius                         # (B, S, N)
    ar = jnp.arange(N, dtype=jnp.int32)
    key = jnp.where(mask, ar, N + ar)
    order = jnp.argsort(key, axis=-1).astype(jnp.int32)
    idx = order[..., :nsample]
    cnt = jnp.sum(mask, axis=-1, keepdims=True)
    pos = jnp.arange(nsample)
    return jnp.where(pos[None, None, :] < cnt, idx, idx[..., :1])


# ----------------------------------------------------------------------------
# Parameters (deterministic, synthetic) and forward pass.
# ----------------------------------------------------------------------------
def init_params(key, in_channels, out_channels, num_gp):
    cin_agg = 3 + 2 * in_channels                  # CHANNEL_MAP['dp_fj_df']
    ks = jax.random.split(key, 5)

    def w(k, ci, co):
        return jax.random.normal(k, (ci, co), jnp.float32) / jnp.sqrt(ci)

    eps = 1e-5
    bn_scale = jnp.full((1, out_channels), 1.0 / jnp.sqrt(1.0 + eps), jnp.float32)
    bn_shift = jnp.zeros((1, out_channels), jnp.float32)
    return dict(
        w_conv=w(ks[0], cin_agg, out_channels),         # self.convs (layers=1)
        w_attn_local=w(ks[1], cin_agg, out_channels),   # self.attn_local
        w_gconv=w(ks[2], cin_agg, out_channels),        # self.gconvs
        w_attn_global=w(ks[3], cin_agg, out_channels),  # self.attn_global
        z=jax.random.normal(ks[4], (num_gp, in_channels), jnp.float32),
        alpha=jnp.zeros((1,), jnp.float32),
        bn_scale=bn_scale, bn_shift=bn_shift,
    )


def spalpa_forward(p, f, params, *, stride, nsample, radius, gamma,
                   tau_local=1.0, tau_delta=1.0):
    """p: (B, N, 3), f: (B, D, N) (PyTorch layout). Returns (new_p, f, idx)."""
    B, N, _ = p.shape
    D = f.shape[1]
    S = N // stride
    C = params['w_conv'].shape[1]
    M = params['z'].shape[0]

    vmem_limit, exp_dtype = _tpu_config()
    W = prepare_weights(params, d_in=D, tau_local=tau_local, tau_delta=tau_delta)

    # one concatenated [p | f] array -> a single gather per point set
    f_cl = jnp.transpose(f, (0, 2, 1))                           # (B, N, D)
    pf = jnp.concatenate([p, f_cl], axis=-1)                     # (B, N, 3+D)

    idx = furthest_point_sample(p, S)                            # (B, S)
    npfi = jnp.take_along_axis(pf, idx[:, :, None], axis=1)      # (B, S, 3+D)
    new_p = npfi[..., :3]                                        # (B, S, 3) f32
    fi_bf = npfi[..., 3:].astype(jnp.bfloat16)                   # (B, S, D)
    pT = jnp.transpose(new_p, (0, 2, 1))                         # (B, 3, S)

    gidx = ball_query(radius, nsample, p, new_p)                 # (B, S, K)
    pf_bf = pf.astype(jnp.bfloat16)
    grouped_pf = jax.vmap(lambda a, i: a[i])(pf_bf, gidx)        # (B,S,K,3+D) bf16

    # global branch: per-(B, M) term T_m (lane-dense (B, M, 2C) output)
    tm = global_term(fi_bf, new_p, pT, params['z'].astype(jnp.bfloat16),
                     W['wp_g'], W['wgf_g'], gamma=gamma, vmem_limit=vmem_limit)

    # fused local LPA + global combine
    ts = _pick_tile(S, nsample, M, D, C, vmem_limit)
    npfi_bf = npfi.astype(jnp.bfloat16)
    f_out = lpa_fused(grouped_pf, npfi_bf, tm,
                      W['w_grp_l'], W['w_pt_l'], W['b_l'],
                      W['w_pt_g'], W['b_g'],
                      cout=C, ts=ts, vmem_limit=vmem_limit,
                      exp_dtype=exp_dtype)                       # (B, S, C)

    # TODO(synk): emit the (B, C, S) layout directly from kernel B (in-tile
    # transpose on the idle XLU) to drop this extra XLA transpose pass.
    return new_p, jnp.transpose(f_out, (0, 2, 1)), idx


if __name__ == "__main__":
    key = jax.random.PRNGKey(0)
    kp, kf, kparam = jax.random.split(key, 3)

    # small demo shapes; C_out=128 keeps the output lane-dense (as in real configs)
    B, N, D_in, C_out = 2, 32, 8, 128
    stride, nsample, num_gp = 4, 16, 16

    p = jax.random.uniform(kp, (B, N, 3), jnp.float32)       # points
    f = jax.random.normal(kf, (B, D_in, N), jnp.float32)     # features (B, D, N)
    params = init_params(kparam, D_in, C_out, num_gp)

    fwd = jax.jit(functools.partial(
        spalpa_forward, stride=stride, nsample=nsample,
        radius=0.5, gamma=16.0, tau_local=1.0, tau_delta=1.0))
    new_p, f_out, idx = fwd(p, f, params)
    jax.block_until_ready((new_p, f_out, idx))

    assert new_p.shape == (B, N // stride, 3)
    assert f_out.shape == (B, C_out, N // stride)
    assert idx.shape == (B, N // stride)
    assert bool(jnp.all(jnp.isfinite(f_out)))
    print("KERNEL_OK")
</pallas_src>

<mosaic_0001>
module attributes {stable_mosaic.version = 11 : i64} {
  func.func @_global_kernel(%arg0: i32, %arg1: memref<1x8x8xbf16, #tpu.memory_space<vmem>>, %arg2: memref<1x8x3xf32, #tpu.memory_space<vmem>>, %arg3: memref<1x3x8xf32, #tpu.memory_space<vmem>>, %arg4: memref<16x8xbf16, #tpu.memory_space<vmem>>, %arg5: memref<3x256xf32, #tpu.memory_space<vmem>>, %arg6: memref<8x256xf32, #tpu.memory_space<vmem>>, %arg7: memref<1x16x256xf32, #tpu.memory_space<vmem>>) attributes {dimension_semantics = [#tpu.dimension_semantics<parallel>], iteration_bounds = array<i64: 2>, scalar_prefetch = 0 : i64, scratch_operands = 0 : i64, tpu.core_type = #tpu.core_type<tc>, window_params = [{transform_indices = @transform_0, window_bounds = array<i64: 1, 8, 8>}, {transform_indices = @transform_1, window_bounds = array<i64: 1, 8, 3>}, {transform_indices = @transform_2, window_bounds = array<i64: 1, 3, 8>}, {pipeline_mode = #tpu.pipeline_mode<synchronous>, transform_indices = @transform_3, window_bounds = array<i64: 16, 8>}, {pipeline_mode = #tpu.pipeline_mode<synchronous>, transform_indices = @transform_4, window_bounds = array<i64: 3, 256>}, {pipeline_mode = #tpu.pipeline_mode<synchronous>, transform_indices = @transform_5, window_bounds = array<i64: 8, 256>}, {transform_indices = @transform_6, window_bounds = array<i64: 1, 16, 256>}]} {
    %c0 = arith.constant 0 : index
    %c0_0 = arith.constant 0 : index
    %c0_1 = arith.constant 0 : index
    %0 = vector.load %arg1[%c0, %c0_0, %c0_1] : memref<1x8x8xbf16, #tpu.memory_space<vmem>>, vector<1x8x8xbf16>
    %1 = vector.shape_cast %0 : vector<1x8x8xbf16> to vector<8x8xbf16>
    %c0_2 = arith.constant 0 : index
    %c0_3 = arith.constant 0 : index
    %c0_4 = arith.constant 0 : index
    %2 = vector.load %arg2[%c0_2, %c0_3, %c0_4] : memref<1x8x3xf32, #tpu.memory_space<vmem>>, vector<1x8x3xf32>
    %3 = vector.shape_cast %2 : vector<1x8x3xf32> to vector<8x3xf32>
    %c0_5 = arith.constant 0 : index
    %c0_6 = arith.constant 0 : index
    %c0_7 = arith.constant 0 : index
    %4 = vector.load %arg3[%c0_5, %c0_6, %c0_7] : memref<1x3x8xf32, #tpu.memory_space<vmem>>, vector<1x3x8xf32>
    %5 = vector.shape_cast %4 : vector<1x3x8xf32> to vector<3x8xf32>
    %c0_8 = arith.constant 0 : index
    %c0_9 = arith.constant 0 : index
    %6 = vector.load %arg4[%c0_8, %c0_9] : memref<16x8xbf16, #tpu.memory_space<vmem>>, vector<16x8xbf16>
    %7 = tpu.transpose %1, [1, 0] : vector<8x8xbf16> -> vector<8x8xbf16>
    %cst = arith.constant dense<0.000000e+00> : vector<16x8xf32>
    %8 = tpu.matmul %6, %7, %cst {dimension_numbers = #tpu.dot_dimension_numbers<[1], [0], [0], [1], [0, 0, 1, 1], [], []>} : vector<16x8xbf16>, vector<8x8xbf16>, vector<16x8xf32> -> vector<16x8xf32>
    %cst_10 = arith.constant dense<0xFF800000> : vector<16xf32>
    %9 = vector.multi_reduction <maximumf>, %8, %cst_10 [1] : vector<16x8xf32> to vector<16xf32>
    %10 = vector.shape_cast %9 : vector<16xf32> to vector<16x1xf32>
    %11 = vector.broadcast %10 : vector<16x1xf32> to vector<16x8xf32>
    %12 = arith.subf %8, %11 : vector<16x8xf32>
    %13 = math.exp %12 : vector<16x8xf32>
    %cst_11 = arith.constant dense<0.000000e+00> : vector<16xf32>
    %14 = vector.multi_reduction <add>, %13, %cst_11 [1] : vector<16x8xf32> to vector<16xf32>
    %15 = vector.shape_cast %14 : vector<16xf32> to vector<16x1xf32>
    %16 = tpu.reciprocal %15 {approx = true} : vector<16x1xf32> -> vector<16x1xf32>
    %17 = vector.broadcast %16 : vector<16x1xf32> to vector<16x8xf32>
    %18 = arith.mulf %13, %17 : vector<16x8xf32>
    %cst_12 = arith.constant dense<0.000000e+00> : vector<16x3xf32>
    %19 = tpu.matmul %18, %3, %cst_12 {dimension_numbers = #tpu.dot_dimension_numbers<[1], [0], [0], [1], [0, 0, 1, 1], [], []>} : vector<16x8xf32>, vector<8x3xf32>, vector<16x3xf32> -> vector<16x3xf32>
    %20 = arith.mulf %19, %19 : vector<16x3xf32>
    %cst_13 = arith.constant dense<0.000000e+00> : vector<16xf32>
    %21 = vector.multi_reduction <add>, %20, %cst_13 [1] : vector<16x3xf32> to vector<16xf32>
    %22 = vector.shape_cast %21 : vector<16xf32> to vector<16x1xf32>
    %23 = arith.mulf %5, %5 : vector<3x8xf32>
    %cst_14 = arith.constant dense<0.000000e+00> : vector<8xf32>
    %24 = vector.multi_reduction <add>, %23, %cst_14 [0] : vector<3x8xf32> to vector<8xf32>
    %25 = vector.shape_cast %24 : vector<8xf32> to vector<1x8xf32>
    %cst_15 = arith.constant dense<0.000000e+00> : vector<16x8xf32>
    %26 = tpu.matmul %19, %5, %cst_15 {dimension_numbers = #tpu.dot_dimension_numbers<[1], [0], [0], [1], [0, 0, 1, 1], [], []>} : vector<16x3xf32>, vector<3x8xf32>, vector<16x8xf32> -> vector<16x8xf32>
    %27 = vector.broadcast %22 : vector<16x1xf32> to vector<16x8xf32>
    %28 = vector.broadcast %25 : vector<1x8xf32> to vector<16x8xf32>
    %29 = arith.addf %27, %28 : vector<16x8xf32>
    %cst_16 = arith.constant 2.000000e+00 : f32
    %30 = vector.broadcast %cst_16 : f32 to vector<16x8xf32>
    %31 = arith.mulf %30, %26 : vector<16x8xf32>
    %32 = arith.subf %29, %31 : vector<16x8xf32>
    %cst_17 = arith.constant 0.000000e+00 : f32
    %33 = vector.broadcast %cst_17 : f32 to vector<16x8xf32>
    %34 = arith.maximumf %32, %33 : vector<16x8xf32>
    %cst_18 = arith.constant -1.600000e+01 : f32
    %35 = vector.broadcast %cst_18 : f32 to vector<16x8xf32>
    %36 = arith.mulf %35, %34 : vector<16x8xf32>
    %37 = math.exp %36 : vector<16x8xf32>
    %38 = arith.mulf %18, %37 : vector<16x8xf32>
    %39 = arith.truncf %38 : vector<16x8xf32> to vector<16x8xbf16>
    %cst_19 = arith.constant dense<0.000000e+00> : vector<16x8xf32>
    %40 = tpu.matmul %39, %1, %cst_19 {dimension_numbers = #tpu.dot_dimension_numbers<[1], [0], [0], [1], [0, 0, 1, 1], [], []>} : vector<16x8xbf16>, vector<8x8xbf16>, vector<16x8xf32> -> vector<16x8xf32>
    %c0_20 = arith.constant 0 : index
    %c0_21 = arith.constant 0 : index
    %41 = vector.load %arg5[%c0_20, %c0_21] : memref<3x256xf32, #tpu.memory_space<vmem>>, vector<3x256xf32>
    %cst_22 = arith.constant dense<0.000000e+00> : vector<16x256xf32>
    %42 = tpu.matmul %19, %41, %cst_22 {dimension_numbers = #tpu.dot_dimension_numbers<[1], [0], [0], [1], [0, 0, 1, 1], [], []>} : vector<16x3xf32>, vector<3x256xf32>, vector<16x256xf32> -> vector<16x256xf32>
    %c0_23 = arith.constant 0 : index
    %c0_24 = arith.constant 0 : index
    %43 = vector.load %arg6[%c0_23, %c0_24] : memref<8x256xf32, #tpu.memory_space<vmem>>, vector<8x256xf32>
    %cst_25 = arith.constant dense<0.000000e+00> : vector<16x256xf32>
    %44 = tpu.matmul %40, %43, %cst_25 {dimension_numbers = #tpu.dot_dimension_numbers<[1], [0], [0], [1], [0, 0, 1, 1], [], []>} : vector<16x8xf32>, vector<8x256xf32>, vector<16x256xf32> -> vector<16x256xf32>
    %45 = arith.addf %42, %44 : vector<16x256xf32>
    %c0_26 = arith.constant 0 : index
    %c0_27 = arith.constant 0 : index
    %c0_28 = arith.constant 0 : index
    %46 = vector.load %arg7[%c0_26, %c0_27, %c0_28] : memref<1x16x256xf32, #tpu.memory_space<vmem>>, vector<1x16x256xf32>
    %47 = vector.shape_cast %46 : vector<1x16x256xf32> to vector<16x256xf32>
    %48 = vector.shape_cast %45 : vector<16x256xf32> to vector<1x16x256xf32>
    tpu.vector_store %arg7[%c0_26, %c0_27, %c0_28], %48 {strides = array<i32>} : memref<1x16x256xf32, #tpu.memory_space<vmem>>, vector<1x16x256xf32>,
    return
  }
  func.func @transform_0(%arg0: i32) -> (i32, i32, i32) {
    %c0_i32 = arith.constant 0 : i32
    %c0_i32_0 = arith.constant 0 : i32
    %c0_i32_1 = arith.constant 0 : i32
    return %arg0, %c0_i32, %c0_i32_0 : i32, i32, i32
  }
  func.func @transform_1(%arg0: i32) -> (i32, i32, i32) {
    %c0_i32 = arith.constant 0 : i32
    %c0_i32_0 = arith.constant 0 : i32
    %c0_i32_1 = arith.constant 0 : i32
    return %arg0, %c0_i32, %c0_i32_0 : i32, i32, i32
  }
  func.func @transform_2(%arg0: i32) -> (i32, i32, i32) {
    %c0_i32 = arith.constant 0 : i32
    %c0_i32_0 = arith.constant 0 : i32
    %c0_i32_1 = arith.constant 0 : i32
    return %arg0, %c0_i32, %c0_i32_0 : i32, i32, i32
  }
  func.func @transform_3(%arg0: i32) -> (i32, i32) {
    %c0_i32 = arith.constant 0 : i32
    %c0_i32_0 = arith.constant 0 : i32
    %c0_i32_1 = arith.constant 0 : i32
    return %c0_i32, %c0_i32_0 : i32, i32
  }
  func.func @transform_4(%arg0: i32) -> (i32, i32) {
    %c0_i32 = arith.constant 0 : i32
    %c0_i32_0 = arith.constant 0 : i32
    %c0_i32_1 = arith.constant 0 : i32
    return %c0_i32, %c0_i32_0 : i32, i32
  }
  func.func @transform_5(%arg0: i32) -> (i32, i32) {
    %c0_i32 = arith.constant 0 : i32
    %c0_i32_0 = arith.constant 0 : i32
    %c0_i32_1 = arith.constant 0 : i32
    return %c0_i32, %c0_i32_0 : i32, i32
  }
  func.func @transform_6(%arg0: i32) -> (i32, i32, i32) {
    %c0_i32 = arith.constant 0 : i32
    %c0_i32_0 = arith.constant 0 : i32
    %c0_i32_1 = arith.constant 0 : i32
    return %arg0, %c0_i32, %c0_i32_0 : i32, i32, i32
  }
}

module attributes {stable_mosaic.version = 11 : i64} {
  func.func @_lpa_fused_kernel(%arg0: i32, %arg1: i32, %arg2: memref<1x8x16x11xbf16, #tpu.memory_space<vmem>>, %arg3: memref<1x8x11xbf16, #tpu.memory_space<vmem>>, %arg4: memref<1x16x256xf32, #tpu.memory_space<vmem>>, %arg5: memref<11x256xbf16, #tpu.memory_space<vmem>>, %arg6: memref<11x256xbf16, #tpu.memory_space<vmem>>, %arg7: memref<1x256xf32, #tpu.memory_space<vmem>>, %arg8: memref<11x256xbf16, #tpu.memory_space<vmem>>, %arg9: memref<1x256xf32, #tpu.memory_space<vmem>>, %arg10: memref<1x8x128xf32, #tpu.memory_space<vmem>>) attributes {dimension_semantics = [#tpu.dimension_semantics<parallel>, #tpu.dimension_semantics<parallel>], iteration_bounds = array<i64: 2, 1>, scalar_prefetch = 0 : i64, scratch_operands = 0 : i64, tpu.core_type = #tpu.core_type<tc>, window_params = [{transform_indices = @transform_0, window_bounds = array<i64: 1, 8, 16, 11>}, {transform_indices = @transform_1, window_bounds = array<i64: 1, 8, 11>}, {transform_indices = @transform_2, window_bounds = array<i64: 1, 16, 256>}, {pipeline_mode = #tpu.pipeline_mode<synchronous>, transform_indices = @transform_3, window_bounds = array<i64: 11, 256>}, {pipeline_mode = #tpu.pipeline_mode<synchronous>, transform_indices = @transform_4, window_bounds = array<i64: 11, 256>}, {pipeline_mode = #tpu.pipeline_mode<synchronous>, transform_indices = @transform_5, window_bounds = array<i64: 1, 256>}, {pipeline_mode = #tpu.pipeline_mode<synchronous>, transform_indices = @transform_6, window_bounds = array<i64: 11, 256>}, {pipeline_mode = #tpu.pipeline_mode<synchronous>, transform_indices = @transform_7, window_bounds = array<i64: 1, 256>}, {transform_indices = @transform_8, window_bounds = array<i64: 1, 8, 128>}]} {
    %c0 = arith.constant 0 : index
    %c0_0 = arith.constant 0 : index
    %c0_1 = arith.constant 0 : index
    %c0_2 = arith.constant 0 : index
    %0 = vector.load %arg2[%c0, %c0_0, %c0_1, %c0_2] : memref<1x8x16x11xbf16, #tpu.memory_space<vmem>>, vector<1x8x16x11xbf16>
    %1 = vector.shape_cast %0 : vector<1x8x16x11xbf16> to vector<8x16x11xbf16>
    %2 = vector.shape_cast %1 : vector<8x16x11xbf16> to vector<128x11xbf16>
    %c0_3 = arith.constant 0 : index
    %c0_4 = arith.constant 0 : index
    %c0_5 = arith.constant 0 : index
    %3 = vector.load %arg3[%c0_3, %c0_4, %c0_5] : memref<1x8x11xbf16, #tpu.memory_space<vmem>>, vector<1x8x11xbf16>
    %4 = vector.shape_cast %3 : vector<1x8x11xbf16> to vector<8x11xbf16>
    %c0_6 = arith.constant 0 : index
    %c0_7 = arith.constant 0 : index
    %5 = vector.load %arg5[%c0_6, %c0_7] : memref<11x256xbf16, #tpu.memory_space<vmem>>, vector<11x256xbf16>
    %cst = arith.constant dense<0.000000e+00> : vector<128x256xf32>
    %6 = tpu.matmul %2, %5, %cst {dimension_numbers = #tpu.dot_dimension_numbers<[1], [0], [0], [1], [0, 0, 1, 1], [], []>} : vector<128x11xbf16>, vector<11x256xbf16>, vector<128x256xf32> -> vector<128x256xf32>
    %c0_8 = arith.constant 0 : index
    %c0_9 = arith.constant 0 : index
    %7 = vector.load %arg6[%c0_8, %c0_9] : memref<11x256xbf16, #tpu.memory_space<vmem>>, vector<11x256xbf16>
    %cst_10 = arith.constant dense<0.000000e+00> : vector<8x256xf32>
    %8 = tpu.matmul %4, %7, %cst_10 {dimension_numbers = #tpu.dot_dimension_numbers<[1], [0], [0], [1], [0, 0, 1, 1], [], []>} : vector<8x11xbf16>, vector<11x256xbf16>, vector<8x256xf32> -> vector<8x256xf32>
    %c0_11 = arith.constant 0 : index
    %c0_12 = arith.constant 0 : index
    %9 = vector.load %arg7[%c0_11, %c0_12] : memref<1x256xf32, #tpu.memory_space<vmem>>, vector<1x256xf32>
    %10 = vector.broadcast %9 : vector<1x256xf32> to vector<8x256xf32>
    %11 = arith.subf %8, %10 : vector<8x256xf32>
    %12 = vector.shape_cast %6 : vector<128x256xf32> to vector<8x16x256xf32>
    %13 = vector.shape_cast %11 : vector<8x256xf32> to vector<8x1x256xf32>
    %14 = vector.broadcast %13 : vector<8x1x256xf32> to vector<8x16x256xf32>
    %15 = arith.subf %12, %14 : vector<8x16x256xf32>
    %16 = vector.extract_strided_slice %15 {offsets = [0, 0, 0], sizes = [8, 16, 128], strides = [1, 1, 1]} : vector<8x16x256xf32> to vector<8x16x128xf32>
    %cst_13 = arith.constant 0.000000e+00 : f32
    %17 = vector.broadcast %cst_13 : f32 to vector<8x16x128xf32>
    %18 = arith.maximumf %16, %17 : vector<8x16x128xf32>
    %19 = vector.extract_strided_slice %15 {offsets = [0, 0, 128], sizes = [8, 16, 128], strides = [1, 1, 1]} : vector<8x16x256xf32> to vector<8x16x128xf32>
    %cst_14 = arith.constant dense<0xFF800000> : vector<8x128xf32>
    %20 = vector.multi_reduction <maximumf>, %19, %cst_14 [1] : vector<8x16x128xf32> to vector<8x128xf32>
    %21 = vector.shape_cast %20 : vector<8x128xf32> to vector<8x1x128xf32>
    %22 = vector.broadcast %21 : vector<8x1x128xf32> to vector<8x16x128xf32>
    %23 = arith.subf %19, %22 : vector<8x16x128xf32>
    %24 = math.exp %23 : vector<8x16x128xf32>
    %25 = arith.mulf %24, %18 : vector<8x16x128xf32>
    %cst_15 = arith.constant dense<0.000000e+00> : vector<8x128xf32>
    %26 = vector.multi_reduction <add>, %25, %cst_15 [1] : vector<8x16x128xf32> to vector<8x128xf32>
    %cst_16 = arith.constant dense<0.000000e+00> : vector<8x128xf32>
    %27 = vector.multi_reduction <add>, %24, %cst_16 [1] : vector<8x16x128xf32> to vector<8x128xf32>
    %28 = tpu.reciprocal %27 {approx = true} : vector<8x128xf32> -> vector<8x128xf32>
    %29 = arith.mulf %26, %28 : vector<8x128xf32>
    %c0_17 = arith.constant 0 : index
    %c0_18 = arith.constant 0 : index
    %30 = vector.load %arg8[%c0_17, %c0_18] : memref<11x256xbf16, #tpu.memory_space<vmem>>, vector<11x256xbf16>
    %cst_19 = arith.constant dense<0.000000e+00> : vector<8x256xf32>
    %31 = tpu.matmul %4, %30, %cst_19 {dimension_numbers = #tpu.dot_dimension_numbers<[1], [0], [0], [1], [0, 0, 1, 1], [], []>} : vector<8x11xbf16>, vector<11x256xbf16>, vector<8x256xf32> -> vector<8x256xf32>
    %c0_20 = arith.constant 0 : index
    %c0_21 = arith.constant 0 : index
    %32 = vector.load %arg9[%c0_20, %c0_21] : memref<1x256xf32, #tpu.memory_space<vmem>>, vector<1x256xf32>
    %33 = vector.broadcast %32 : vector<1x256xf32> to vector<8x256xf32>
    %34 = arith.subf %31, %33 : vector<8x256xf32>
    %c0_22 = arith.constant 0 : index
    %c0_23 = arith.constant 0 : index
    %c0_24 = arith.constant 0 : index
    %35 = vector.load %arg4[%c0_22, %c0_23, %c0_24] : memref<1x16x256xf32, #tpu.memory_space<vmem>>, vector<1x16x256xf32>
    %36 = vector.shape_cast %35 : vector<1x16x256xf32> to vector<16x256xf32>
    %37 = vector.shape_cast %36 : vector<16x256xf32> to vector<1x16x256xf32>
    %38 = vector.shape_cast %34 : vector<8x256xf32> to vector<8x1x256xf32>
    %39 = vector.broadcast %37 : vector<1x16x256xf32> to vector<8x16x256xf32>
    %40 = vector.broadcast %38 : vector<8x1x256xf32> to vector<8x16x256xf32>
    %41 = arith.subf %39, %40 : vector<8x16x256xf32>
    %42 = vector.extract_strided_slice %41 {offsets = [0, 0, 0], sizes = [8, 16, 128], strides = [1, 1, 1]} : vector<8x16x256xf32> to vector<8x16x128xf32>
    %cst_25 = arith.constant 0.000000e+00 : f32
    %43 = vector.broadcast %cst_25 : f32 to vector<8x16x128xf32>
    %44 = arith.maximumf %42, %43 : vector<8x16x128xf32>
    %45 = vector.extract_strided_slice %41 {offsets = [0, 0, 128], sizes = [8, 16, 128], strides = [1, 1, 1]} : vector<8x16x256xf32> to vector<8x16x128xf32>
    %cst_26 = arith.constant dense<0xFF800000> : vector<8x128xf32>
    %46 = vector.multi_reduction <maximumf>, %45, %cst_26 [1] : vector<8x16x128xf32> to vector<8x128xf32>
    %47 = vector.shape_cast %46 : vector<8x128xf32> to vector<8x1x128xf32>
    %48 = vector.broadcast %47 : vector<8x1x128xf32> to vector<8x16x128xf32>
    %49 = arith.subf %45, %48 : vector<8x16x128xf32>
    %50 = math.exp %49 : vector<8x16x128xf32>
    %51 = arith.mulf %50, %44 : vector<8x16x128xf32>
    %cst_27 = arith.constant dense<0.000000e+00> : vector<8x128xf32>
    %52 = vector.multi_reduction <add>, %51, %cst_27 [1] : vector<8x16x128xf32> to vector<8x128xf32>
    %cst_28 = arith.constant dense<0.000000e+00> : vector<8x128xf32>
    %53 = vector.multi_reduction <add>, %50, %cst_28 [1] : vector<8x16x128xf32> to vector<8x128xf32>
    %54 = tpu.reciprocal %53 {approx = true} : vector<8x128xf32> -> vector<8x128xf32>
    %55 = arith.mulf %52, %54 : vector<8x128xf32>
    %56 = arith.addf %29, %55 : vector<8x128xf32>
    %c0_29 = arith.constant 0 : index
    %c0_30 = arith.constant 0 : index
    %c0_31 = arith.constant 0 : index
    %57 = vector.load %arg10[%c0_29, %c0_30, %c0_31] : memref<1x8x128xf32, #tpu.memory_space<vmem>>, vector<1x8x128xf32>
    %58 = vector.shape_cast %57 : vector<1x8x128xf32> to vector<8x128xf32>
    %59 = vector.shape_cast %56 : vector<8x128xf32> to vector<1x8x128xf32>
    tpu.vector_store %arg10[%c0_29, %c0_30, %c0_31], %59 {strides = array<i32>} : memref<1x8x128xf32, #tpu.memory_space<vmem>>, vector<1x8x128xf32>,
    return
  }
  func.func @transform_0(%arg0: i32, %arg1: i32) -> (i32, i32, i32, i32) {
    %c0_i32 = arith.constant 0 : i32
    %c0_i32_0 = arith.constant 0 : i32
    %c0_i32_1 = arith.constant 0 : i32
    return %arg0, %arg1, %c0_i32, %c0_i32_0 : i32, i32, i32, i32
  }
  func.func @transform_1(%arg0: i32, %arg1: i32) -> (i32, i32, i32) {
    %c0_i32 = arith.constant 0 : i32
    %c0_i32_0 = arith.constant 0 : i32
    return %arg0, %arg1, %c0_i32 : i32, i32, i32
  }
  func.func @transform_2(%arg0: i32, %arg1: i32) -> (i32, i32, i32) {
    %c0_i32 = arith.constant 0 : i32
    %c0_i32_0 = arith.constant 0 : i32
    %c0_i32_1 = arith.constant 0 : i32
    return %arg0, %c0_i32, %c0_i32_0 : i32, i32, i32
  }
  func.func @transform_3(%arg0: i32, %arg1: i32) -> (i32, i32) {
    %c0_i32 = arith.constant 0 : i32
    %c0_i32_0 = arith.constant 0 : i32
    %c0_i32_1 = arith.constant 0 : i32
    return %c0_i32, %c0_i32_0 : i32, i32
  }
  func.func @transform_4(%arg0: i32, %arg1: i32) -> (i32, i32) {
    %c0_i32 = arith.constant 0 : i32
    %c0_i32_0 = arith.constant 0 : i32
    %c0_i32_1 = arith.constant 0 : i32
    return %c0_i32, %c0_i32_0 : i32, i32
  }
  func.func @transform_5(%arg0: i32, %arg1: i32) -> (i32, i32) {
    %c0_i32 = arith.constant 0 : i32
    %c0_i32_0 = arith.constant 0 : i32
    %c0_i32_1 = arith.constant 0 : i32
    return %c0_i32, %c0_i32_0 : i32, i32
  }
  func.func @transform_6(%arg0: i32, %arg1: i32) -> (i32, i32) {
    %c0_i32 = arith.constant 0 : i32
    %c0_i32_0 = arith.constant 0 : i32
    %c0_i32_1 = arith.constant 0 : i32
    return %c0_i32, %c0_i32_0 : i32, i32
  }
  func.func @transform_7(%arg0: i32, %arg1: i32) -> (i32, i32) {
    %c0_i32 = arith.constant 0 : i32
    %c0_i32_0 = arith.constant 0 : i32
    %c0_i32_1 = arith.constant 0 : i32
    return %c0_i32, %c0_i32_0 : i32, i32
  }
  func.func @transform_8(%arg0: i32, %arg1: i32) -> (i32, i32, i32) {
    %c0_i32 = arith.constant 0 : i32
    %c0_i32_0 = arith.constant 0 : i32
    return %arg0, %arg1, %c0_i32 : i32, i32, i32
  }
}

</mosaic_0001>

<bundles_post_ra>
// kernel: custom-call.6
= control target key start
LH: loop header
LB: loop body
LE: loop exit
PB: predicated region body
PF: predicated region fallthrough
CT: control target
= control target key end

     0   :  { %s6_s0 = inlined_call_operand.vmem [shape: f32[2,32], index: 0, kind: output, shape index: {}]  }

// kernel: spalpa_forward.2
= control target key start
LH: loop header
LB: loop body
LE: loop exit
PB: predicated region body
PF: predicated region fallthrough
CT: control target
= control target key end

     0   :  { %s744_s21 = smov 0   ;;  %s820_s0 = inlined_call_operand.vmem [shape: bf16[2,8,8], index: 0, kind: input, shape index: {}]   ;;  %s821_s1 = inlined_call_operand.vmem [shape: f32[2,8,3], index: 1, kind: input, shape index: {}]   ;;  %s822_s2 = inlined_call_operand.vmem [shape: f32[2,3,8], index: 2, kind: input, shape index: {}]   ;;  %s823_s3 = inlined_call_operand.vmem [shape: bf16[16,8], index: 3, kind: input, shape index: {}]   ;;  %s824_s4 = inlined_call_operand.vmem [shape: f32[3,256], index: 4, kind: input, shape index: {}]   ;;  %s825_s5 = inlined_call_operand.vmem [shape: f32[8,256], index: 5, kind: input, shape index: {}]   ;;  %s826_s6 = inlined_call_operand.vmem [shape: f32[2,16,256], index: 6, kind: output, shape index: {}]  }
   0x1 LB: > { %s646_s22 = sadd.s32 4294967295, %s707_s21   ;;  %p650_p0 = scmp.ge.s32.totalorder %s707_s21, 1  ;;  %s707_s21 = sphi %s744_s21, %s16_s21  }
   0x2   : > { %p229_p1 = scmp.lt.s32.totalorder %s707_s21, 3 }
   0x4   : > { %p230_p2 = pnand %p650_p0, %p229_p1 }
   0x5   : > { %p266_p3 = scmp.lt.s32.totalorder (!%p230_p2), %s646_s22, 1 }
   0x6   : > { %233 = sbr.rel (%p230_p2) target bundleno = 965 (0x3c5), region = 44 }
   0xb   : > { %s828_s22 = smov (!%p266_p3, %s646_s22), 1  ;;  %vm294_vm0 = vcmask 64512   ;;  %v680_v2 = vld [vmem:[%s823_s3] sm:$0xff]  ;;  %vm390_vm1 = vcmask 1042432   ;;  %vm368_vm2 = vcmask 23552   ;;  %vm376_vm3 = vcmask 59392  }
   0xc   : > { %s651_s23 = sshll.u32 %s828_s22, 2  ;;  %s652_s29 = sshll.u32 %s828_s22, 3  ;;  %v454_v24 = vld [vmem:[%s824_s4] sm:$0x77]  ;;  %vm437_vm4 = vcmask 1043456   ;;  %v456_v59 = vld [vmem:[%s825_s5 + $0x8] sm:$0xff] }
   0xd   : > { %s269_s26 = scalar_lea.vmem %s820_s0, %s651_s23  ;;  %s273_s8 = scalar_lea.vmem %s821_s1, %s652_s29  ;;  %510 = vst [vmem:[#allocation1] ss:$2 sm:$0xff] %v454_v24  ;;  %v455_v60 = vld [vmem:[%s825_s5] sm:$0xff] }
   0xe   : > { %v760_v0 = vld [vmem:[%s269_s26] sm:$0xf]  ;;  %s277_s13 = scalar_lea.vmem %s822_s2, %s651_s23  ;;  %s679_s18 = sshll.u32 %s828_s22, 5 }
   0xf   : > { %v299_v1 = vsel %vm294_vm0, %v760_v0, 0  ;;  %v285_v17 = vld [vmem:[%s273_s8] sm:$0xff]  ;;  %v438_v38 = vsel %vm437_vm4, %v760_v0, 0  ;;  %s282_s23 = scalar_lea.vmem %s826_s6, %s679_s18 }
  0x10   : > { %308 = vmatpush.bf16.xpose.msra.mxu0 %v299_v1  ;;  %358 = vmatpush.msra.mxu1 %v285_v17  ;;  %v286_v25 = vld [vmem:[%s277_s13] sm:$0x7] }
  0x11   : > { %663 = vmatpush.msk.msra.mxu2 %vm390_vm1, %v286_v25  ;;  %v375_v33 = vmul.f32 %v286_v25, %v286_v25  ;;  %447 = vmatpush.bf16.msra.mxu3 %v438_v38 }
  0x12   : > { %478 = vmatpush.msrb.mxu1 %v455_v60 }
  0x13   : > { %v377_v34 = vsel %vm376_vm3, %v375_v33, 0.0  ;;  %501 = vmatpush.msrb.mxu2 %v456_v59 }
  0x14   : > { %v512_v26 = vld.sshfl [vmem:[#allocation1 + $0x8] sm:$0xff pattern:$0x75316420]  ;;  %v378_v35 = vrot.slane %v377_v34, 4 }
  0x15   : > { %v511_v43 = vld.sshfl [vmem:[#allocation1] sm:$0xff pattern:$0x75316420] }
  0x16   : > { %v379_v36 = vadd.f32 %v378_v35, %v377_v34  ;;  %671 = vmatpush.msk.msrb.mxu3 %vm390_vm1, %v511_v43 }
  0x17   : > { %660 = vmatmul.msk.bf16.vlgmr.msra.gmra.mxu0 %vm294_vm0, %v680_v2 }
  0x18   : > { %674 = vmatpush.msk.msrb.mxu0 %vm390_vm1, %v512_v26  ;;  %v380_v37 = vrot.slane %v379_v36, 2 }
  0x1a   : > { %v381_v39 = vadd.f32 %v380_v37, %v379_v36 }
  0x1c   : > { %v382_v40 = vrot.slane %v381_v39, 1 }
  0x1e   : > { %v383_v42 = vadd.f32 %v382_v40, %v381_v39 }
  0x94   : > { %v310_v3 = vpop.f32.mrf.mxu0 }
  0x95   : > { %v315_v4 = vsel %vm294_vm0, %v310_v3, -inf }
  0x96   : > { %316 = vmax.xlane.f32.xlu0 %v315_v4 }
  0x9c   : > { %v312_v5 = vpop.f32.mrf.mxu0 }
  0x9d   : > { %v318_v6 = vsel %vm294_vm0, %v312_v5, -inf }
  0x9e   : > { %319 = vmax.xlane.f32.xlu0 %v318_v6 }
 0x109   : > { %v317_v7 = vpop.xlane.xlu0 %316 }
 0x10a   : > { %v321_v8 = vsub.f32 %v310_v3, %v317_v7 }
 0x10c   : > { %v323_v9 = vmul.f32 1.442695, %v321_v8 }
 0x10e   : > { %689 = vpow2.f32 %v323_v9 }
 0x111   : > { %v320_v10 = vpop.xlane.xlu0 %319 }
 0x112   : > { %v322_v11 = vsub.f32 %v312_v5, %v320_v10 }
 0x114   : > { %v690_v12 = vpop.eup %689  ;;  %v325_v13 = vmul.f32 1.442695, %v322_v11 }
 0x115   : > { %v327_v14 = vsel %vm294_vm0, %v690_v12, 0.0 }
 0x116   : > { %691 = vpow2.f32 %v325_v13  ;;  %328 = vadd.xlane.f32.xlu1 %v327_v14 }
 0x11c   : > { %v692_v15 = vpop.eup %691 }
 0x11d   : > { %v330_v16 = vsel %vm294_vm0, %v692_v15, 0.0 }
 0x11e   : > { %331 = vadd.xlane.f32.xlu1 %v330_v16 }
 0x189   : > { %v329_v18 = vpop.xlane.xlu1 %328 }
 0x18a   : > { %693 = vrcp.f32 %v329_v18 }
 0x190   : > { %v694_v19 = vpop.eup %693 }
 0x191   : > { %v332_v20 = vpop.xlane.xlu1 %331  ;;  %v776_v21 = vmul.f32 %v694_v19, %v690_v12 }
 0x192   : > { %695 = vrcp.f32 %v332_v20 }
 0x193   : > { %661 = vmatmul.msk.f32.vlgmr.msra.gmra.mxu1 %vm294_vm0, %v776_v21 }
 0x198   : > { %v696_v22 = vpop.eup %695 }
 0x199   : > { %v336_v23 = vmul.f32 %v696_v22, %v692_v15 }
 0x19b   : > { %662 = vmatmul.msk.f32.gmra.mxu1 %vm294_vm0, %v336_v23 }
 0x210   : > { %v360_v27 = vpop.f32.mrf.mxu1 }
 0x211   : > { %664 = vmatmul.msk.f32.vlgmr.msra.gmra.mxu2 %vm368_vm2, %v360_v27  ;;  %675 = vmatmul.msk.f32.vlgmr.msrb.gmra.mxu0 %vm368_vm2, %v360_v27  ;;  %v366_v28 = vmul.f32 %v360_v27, %v360_v27 }
 0x213   : > { %v369_v29 = vsel %vm368_vm2, %v366_v28, 0.0 }
 0x214   : > { %370 = vadd.xlane.f32.xlu2 %v369_v29 }
 0x218   : > { %v363_v30 = vpop.f32.mrf.mxu1 }
 0x219   : > { %665 = vmatmul.msk.f32.gmra.mxu2 %vm368_vm2, %v363_v30  ;;  %676 = vmatmul.msk.f32.gmra.mxu0 %vm368_vm2, %v363_v30  ;;  %v367_v31 = vmul.f32 %v363_v30, %v363_v30 }
 0x21b   : > { %v372_v32 = vsel %vm368_vm2, %v367_v31, 0.0 }
 0x21c   : > { %373 = vadd.xlane.f32.xlu2 %v372_v32 }
 0x287   : > { %v371_v41 = vpop.xlane.xlu2 %370 }
 0x288   : > { %v417_v45 = vadd.f32 %v383_v42, %v371_v41 }
 0x28e   : > { %v557_v7 = vpop.f32.mrf.mxu0 }
 0x28f   : > { %v374_v49 = vpop.xlane.xlu2 %373 }
 0x290   : > { %v418_v51 = vadd.f32 %v383_v42, %v374_v49 }
 0x294   : > { %v411_v44 = vpop.f32.mrf.mxu2 }
 0x295   : > { %v419_v46 = vmul.f32 2.0, %v411_v44 }
 0x296   : > { %v560_v13 = vpop.f32.mrf.mxu0 }
 0x297   : > { %v421_v47 = vsub.f32 %v417_v45, %v419_v46 }
 0x299   : > { %v423_v48 = vmax.f32 %v421_v47, 0.0 }
 0x29b   : > { %v425_v52 = vmul.f32 -16.0, %v423_v48 }
 0x29c   : > { %v414_v50 = vpop.f32.mrf.mxu2 }
 0x29d   : > { %v420_v53 = vmul.f32 2.0, %v414_v50  ;;  %v427_v55 = vmul.f32 1.442695, %v425_v52 }
 0x29f   : > { %v422_v54 = vsub.f32 %v418_v51, %v420_v53  ;;  %697 = vpow2.f32 %v427_v55 }
 0x2a1   : > { %v424_v56 = vmax.f32 %v422_v54, 0.0 }
 0x2a3   : > { %v426_v57 = vmul.f32 -16.0, %v424_v56 }
 0x2a5   : > { %v429_v58 = vmul.f32 1.442695, %v426_v57  ;;  %v698_v61 = vpop.eup %697 }
 0x2a6   : > { %v431_v63 = vmul.f32 %v698_v61, %v776_v21 }
 0x2a7   : > { %699 = vpow2.f32 %v429_v58 }
 0x2ad   : > { %v700_v62 = vpop.eup %699 }
 0x2ae   : > { %v432_v0 = vmul.f32 %v700_v62, %v336_v23 }
 0x2b0   : > { %v433_v1 = vpack.c.bf16 %v432_v0, %v431_v63 }
 0x2b2   : > { %666 = vmatmul.msk.bf16.vlgmr.msra.gmra.mxu3 %vm294_vm0, %v433_v1 }
 0x2c2   : > { %672 = vmatmul.msk.f32.vlgmr.msrb.gmra.mxu3 %vm368_vm2, %v360_v27 }
 0x2ca   : > { %673 = vmatmul.msk.f32.gmra.mxu3 %vm368_vm2, %v363_v30 }
 0x335   : > { %v449_v2 = vpop.f32.mrf.mxu3 }
 0x336   : > { %667 = vmatmul.msk.f32.vlgmr.msrb.gmra.mxu1 %vm294_vm0, %v449_v2  ;;  %669 = vmatmul.msk.f32.vlgmr.msrb.gmra.mxu2 %vm294_vm0, %v449_v2 }
 0x33d   : > { %v451_v3 = vpop.f32.mrf.mxu3 }
 0x33e   : > { %668 = vmatmul.msk.f32.gmra.mxu1 %vm294_vm0, %v451_v3  ;;  %670 = vmatmul.msk.f32.gmra.mxu2 %vm294_vm0, %v451_v3 }
 0x345   : > { %v534_v4 = vpop.f32.mrf.mxu3 }
 0x34d   : > { %v537_v10 = vpop.f32.mrf.mxu3 }
 0x3b3   : > { %v480_v5 = vpop.f32.mrf.mxu1 }
 0x3b4   : > { %v535_v6 = vadd.f32 %v534_v4, %v480_v5 }
 0x3b6   : > { %563 = vst [vmem:[%s282_s23] sm:$0xff] %v535_v6 }
 0x3b9   : > { %v503_v8 = vpop.f32.mrf.mxu2 }
 0x3ba   : > { %v558_v9 = vadd.f32 %v557_v7, %v503_v8 }
 0x3bb   : > { %v483_v11 = vpop.f32.mrf.mxu1 }
 0x3bc   : > { %564 = vst [vmem:[%s282_s23 + $0x8] sm:$0xff] %v558_v9  ;;  %v538_v12 = vadd.f32 %v537_v10, %v483_v11 }
 0x3be   : > { %565 = vst [vmem:[%s282_s23 + $0x10] sm:$0xff] %v538_v12 }
 0x3c1   : > { %v506_v14 = vpop.f32.mrf.mxu2 }
 0x3c2   : > { %v561_v15 = vadd.f32 %v560_v13, %v506_v14 }
 0x3c4   : > { %566 = vst [vmem:[%s282_s23 + $0x18] sm:$0xff] %v561_v15 }
 0x3c5 PF: > { %s16_s21 = sadd.s32 1, %s707_s21  }
 0x3c6   : > { %p13_p4 = scmp.ge.s32.totalorder %s16_s21, 4  }
 0x3c8   :  { %15 = sbr.rel (!%p13_p4) target bundleno = 1 (0x1), region = 80 }

// kernel: spalpa_forward.3
= control target key start
LH: loop header
LB: loop body
LE: loop exit
PB: predicated region body
PF: predicated region fallthrough
CT: control target
= control target key end

     0   :  { %13 = vsyncpa [#allocation3], 0  ;;  %s2676_s0 = inlined_call_operand.vmem [shape: bf16[2,8,16,11], index: 0, kind: input, shape index: {}]   ;;  %s2677_s1 = inlined_call_operand.vmem [shape: bf16[2,8,11], index: 1, kind: input, shape index: {}]   ;;  %s2678_s2 = inlined_call_operand.vmem [shape: f32[2,16,256], index: 2, kind: input, shape index: {}]   ;;  %s2679_s3 = inlined_call_operand.vmem [shape: bf16[11,256], index: 3, kind: input, shape index: {}]   ;;  %s2680_s4 = inlined_call_operand.vmem [shape: bf16[11,256], index: 4, kind: input, shape index: {}]   ;;  %s2681_s5 = inlined_call_operand.vmem [shape: f32[1,256], index: 5, kind: input, shape index: {}]   ;;  %s2682_s6 = inlined_call_operand.vmem [shape: bf16[11,256], index: 6, kind: input, shape index: {}]   ;;  %s2683_s7 = inlined_call_operand.vmem [shape: f32[1,256], index: 7, kind: input, shape index: {}]   ;;  %s2684_s8 = inlined_call_operand.hbm [shape: f32[2,8,128], index: 8, kind: output, shape index: {}]  }
   0x1   :  { %15 = vsyncpa [#allocation3 + $0x1], 0  ;;  %s1927_s27 = smov 0   ;;  %s1929_s28 = smov 0  }
   0x2   :  { %s1931_s29 = smov 0   ;;  %s1933_s30 = smov 0  }
   0x3   :  { %s1935_s9 = smov 0   ;;  %s1937_s10 = smov 0  }
   0x4 LB: > { %s1540_s11 = sadd.s32 4294967295, %s1879_s10   ;;  %s1541_s12 = sadd.s32 4294967294, %s1879_s10   ;;  %s1879_s10 = sphi %s1937_s10, %s21_s10   ;;  %s1875_s9 = sphi %s1935_s9, %s2745_s9   ;;  %s1871_s30 = sphi %s1933_s30, %s2744_s30   ;;  %s1867_s29 = sphi %s1931_s29, %s2743_s29   ;;  %s1863_s28 = sphi %s1929_s28, %s2742_s28   ;;  %s1859_s27 = sphi %s1927_s27, %s2741_s27  }
   0x5   : > { %s33_s13 = sadd.s32 1, %s1875_s9  ;;  %s229_s14 = sadd.s32 1, %s1867_s29 }
   0x6   : > { %p35_p0 = scmp.ge.s32.totalorder %s33_s13, 2  ;;  %p239_p1 = scmp.ne.s32.totalorder %s1867_s29, %s1863_s28 }
   0x7   : > { %p240_p2 = scmp.eq.s32.totalorder %s1540_s11, 1  ;;  %p245_p3 = scmp.ne.s32.totalorder %s1863_s28, %s1859_s27 }
   0x8   : > { %s2747_s13 = smov (%p35_p0, %s33_s13), 0  ;;  %p246_p5 = scmp.eq.s32.totalorder %s1541_s12, 1 }
   0x9   : > { %p1967_p4 = por %p240_p2, %p239_p1  ;;  %s224_s16 = ssub.s32 %s1875_s9, %s2747_s13 }
   0xa   : > { %p1544_p6 = scmp.ge.s32.totalorder %s1879_s10, 1  ;;  %p227_p7 = scmp.eq.s32.totalorder %s224_s16, 0 }
   0xb   : > { %p1974_p8 = por %p246_p5, %p245_p3  ;;  %p311_p9 = scmp.lt.s32.totalorder %s1879_s10, 3 }
   0xc   : > { %s1980_s18 = scalar_select %p227_p7, %s1867_s29, %s229_s14  }
   0xd   : > { %p312_p10 = pnand %p1544_p6, %p311_p9 }
   0xf   : > { %315 = sbr.rel (%p312_p10) target bundleno = 398 (0x18e), region = 52 }
  0x14   : > { %v1585_v0 = vld [vmem:[%s2679_s3] sm:$0xf]  ;;  %v1642_v1 = vld [vmem:[%s2679_s3 + $0x4] sm:$0x30]  ;;  %vm478_vm0 = vcmask 1044480   ;;  %vm479_vm1 = vcmask 1045504  }
  0x15   : > { %v1586_v2 = vor.u32 %v1642_v1, %v1585_v0  ;;  %v1641_v3 = vld [vmem:[%s2679_s3 + $0x4] sm:$0xf]  ;;  %v1587_v4 = vld [vmem:[%s2679_s3 + $0x8] sm:$0x30]  ;;  %p363_p11 = scmp.lt.s32.totalorder %s1871_s30, 1  ;;  %v1881_v5 = vmov 65535  }
  0x16   : > { %v480_v6 = vsel %vm478_vm0, 4294967295, %v1881_v5  ;;  %v1590_v7 = vor.u32 %v1641_v3, %v1587_v4  ;;  %v1643_v8 = vld [vmem:[%s2680_s4 + $0x4] sm:$0xf]  ;;  %v1611_v9 = vld [vmem:[%s2680_s4 + $0x8] sm:$0x30]  ;;  %vm453_vm2 = vcmask 89088  }
  0x17   : > { %v481_v10 = vsel %vm479_vm1, %v480_v6, 0  ;;  %s2002_s19 = scalar_select %p363_p11, %s1871_s30, 1  ;;  %v1614_v11 = vor.u32 %v1643_v8, %v1611_v9  ;;  %v1609_v12 = vld [vmem:[%s2680_s4] sm:$0xf]  ;;  %v1644_v13 = vld [vmem:[%s2680_s4 + $0x4] sm:$0x30] }
  0x18   : > { %v483_v14 = vand.u32 %v1586_v2, %v481_v10  ;;  %v486_v15 = vand.u32 %v1590_v7, %v481_v10  ;;  %v1610_v16 = vor.u32 %v1644_v13, %v1609_v12  ;;  %v1645_v23 = vld [vmem:[%s2682_s6 + $0x4] sm:$0xf]  ;;  %v1621_v24 = vld [vmem:[%s2682_s6 + $0x8] sm:$0x30]  ;;  %v1619_v25 = vld [vmem:[%s2682_s6] sm:$0xf] }
  0x19   : > { %s1631_s24 = sshll.u32 %s2002_s19, 6  ;;  %v603_v17 = vand.u32 %v1614_v11, %v481_v10  ;;  %v1624_v26 = vor.u32 %v1645_v23, %v1621_v24  ;;  %v1646_v27 = vld [vmem:[%s2682_s6 + $0x4] sm:$0x30]  ;;  %s1548_s25 = sshll.u32 %s2002_s19, 2  ;;  %v631_v60 = vld [vmem:[%s2681_s5] sm:$0x3] }
  0x1a   : > { %495 = vmatpush.bf16.msra.mxu0 %v483_v14  ;;  %1647 = vmatpush.bf16.msra.mxu2 %v483_v14  ;;  %s2014_s11 = scalar_lea.vmem %s2676_s0, %s1631_s24  ;;  %v600_v18 = vand.u32 %v1610_v16, %v481_v10  ;;  %v1620_v28 = vor.u32 %v1646_v27, %v1619_v25  ;;  %s379_s14 = scalar_lea.vmem %s2677_s1, %s1548_s25  ;;  %v633_v61 = vperm.slane %v631_v60, 0  ;;  %v634_v62 = vperm.slane %v631_v60, 1  ;;  %v1035_v25 = vld [vmem:[%s2683_s7] sm:$0x3] }
  0x1b   : > { %544 = vmatpush.bf16.msra.mxu1 %v486_v15  ;;  %1648 = vmatpush.bf16.msra.mxu3 %v486_v15  ;;  %v1633_v19 = vld [vmem:[%s2014_s11] sm:$0xff]  ;;  %v1638_v20 = vld [vmem:[%s2014_s11 + $0x28] sm:$0xff]  ;;  %v1639_v22 = vld [vmem:[%s2014_s11 + $0x30] sm:$0xff]  ;;  %v1007_v29 = vand.u32 %v1624_v26, %v481_v10  ;;  %vm642_vm3 = vcmask 1040384   ;;  %vm650_vm4 = vcmask 1043459   ;;  %vm653_vm5 = vcmask 1044484  }
  0x1c   : > { %v1634_v21 = vld [vmem:[%s2014_s11 + $0x8] sm:$0xff]  ;;  %v1004_v30 = vand.u32 %v1620_v28, %v481_v10  ;;  %v1635_v31 = vld [vmem:[%s2014_s11 + $0x10] sm:$0xff]  ;;  %v1640_v32 = vld [vmem:[%s2014_s11 + $0x38] sm:$0xff]  ;;  %vm644_vm6 = vcmask 1041409   ;;  %vm647_vm7 = vcmask 1042434   ;;  %vm656_vm8 = vcmask 1045509  }
  0x1d   : > { %1591 = vmatmul.msk.bf16.vlgmr.msra.gmra.mxu0 %vm453_vm2, %v1633_v19  ;;  %1596 = vmatmul.msk.bf16.vlgmr.msra.gmra.mxu2 %vm453_vm2, %v1638_v20  ;;  %v1636_v33 = vld [vmem:[%s2014_s11 + $0x18] sm:$0xff]  ;;  %v402_v34 = vld [vmem:[%s379_s14] sm:$0xf]  ;;  %vm659_vm9 = vcmask 1046534   ;;  %vm662_vm10 = vcmask 1046528   ;;  %s1632_s22 = sshll.u32 %s2002_s19, 5 }
  0x1e   : > { %612 = vmatpush.bf16.msrb.mxu2 %v600_v18  ;;  %1599 = vmatmul.msk.bf16.vlgmr.msra.gmra.mxu1 %vm453_vm2, %v1633_v19  ;;  %v1637_v35 = vld [vmem:[%s2014_s11 + $0x20] sm:$0xff]  ;;  %s2370_s24 = scalar_lea.vmem %s2678_s2, %s1632_s22  ;;  %s359_s25 = sand.u32 1, %s1863_s28   ;;  %vm1415_vm11 = vcmask 1047559  }
  0x1f   : > { %625 = vmatpush.bf16.msrb.mxu3 %v603_v17  ;;  %s2623_s26 = sshll.u32 %s359_s25, 3  ;;  %s1628_s12 = sshll.u32 %s1871_s30, 3 }
  0x20   : > { %1604 = vmatmul.msk.bf16.vlgmr.msra.gmra.mxu3 %vm453_vm2, %v1638_v20  ;;  %s1431_s16 = scalar_lea.hbm %s2684_s8, %s1628_s12  ;;  %s361_s30 = scalar_lea.vmem [#allocation2], %s2623_s26 }
  0x21   : > { %s1433_s20 = sshll.u32 %s361_s30, 4  ;;  %s1435_s21 = sshll.u32 %s1431_s16, 4  ;;  %s1434_s20 = int_to_ptr.vmem [resolvable:$true] %s1433_s20  ;;  %s1436_s21 = int_to_ptr.hbm [resolvable:$true] %s1435_s21 }
  0x22   : > { %1016 = vmatpush.bf16.msra.mxu2 %v1004_v30  ;;  %s1420_s22 = scalar_lea.sflag [#allocation3], %s359_s25  ;;  %s1815_s23 = sshra.s32 %s1436_s21, 4  ;;  %s1816_s23 = int_to_ptr.hbm [resolvable:$true] %s1815_s23 }
  0x23   : > { %1029 = vmatpush.bf16.msra.mxu3 %v1007_v29  ;;  %s1817_s19 = scalar_lea.hbm %s1816_s23, 8  ;;  %s1821_s12 = scalar_lea.hbm %s2684_s8, 16 }
  0x24   : > { %p1818_p12 = scmp.ne.s32.totalorder %s1816_s23, %s1817_s19  ;;  %p1822_p1 = scmp.lt.s32.totalorder %s1816_s23, %s2684_s8 }
  0x25   : > { %p1823_p2 = scmp.lt.s32.totalorder %s1821_s12, %s1817_s19 }
  0x26   : > { %p1819_p13 = pnand %p1818_p12, %p1967_p4 }
  0x27   : > { %p1824_p3 = por %p1823_p2, %p1822_p1 }
  0x28   : > { %p1820_p0 = pneg %p1819_p13 }
  0x2a   : > { %p1825_p5 = pnand %p1824_p3, %p1820_p0 }
  0x2d   : > { %1592 = vmatmul.msk.bf16.gmra.mxu0 %vm453_vm2, %v1634_v21  ;;  %1597 = vmatmul.msk.bf16.gmra.mxu2 %vm453_vm2, %v1639_v22 }
  0x2e   : > { %1600 = vmatmul.msk.bf16.gmra.mxu1 %vm453_vm2, %v1634_v21 }
  0x30   : > { %1605 = vmatmul.msk.bf16.gmra.mxu3 %vm453_vm2, %v1639_v22 }
  0x3d   : > { %1593 = vmatmul.msk.bf16.gmra.mxu0 %vm453_vm2, %v1635_v31  ;;  %1598 = vmatmul.msk.bf16.gmra.mxu2 %vm453_vm2, %v1640_v32 }
  0x3e   : > { %1601 = vmatmul.msk.bf16.gmra.mxu1 %vm453_vm2, %v1635_v31 }
  0x40   : > { %1606 = vmatmul.msk.bf16.gmra.mxu3 %vm453_vm2, %v1640_v32  ;;  %v1037_v32 = vperm.slane %v1035_v25, 0 }
  0x4d   : > { %1594 = vmatmul.msk.bf16.gmra.mxu0 %vm453_vm2, %v1636_v33  ;;  %1615 = vmatmul.msk.bf16.vlgmr.msrb.gmra.mxu2 %vm453_vm2, %v402_v34 }
  0x4e   : > { %1602 = vmatmul.msk.bf16.gmra.mxu1 %vm453_vm2, %v1636_v33  ;;  %v1038_v33 = vperm.slane %v1035_v25, 1 }
  0x50   : > { %1616 = vmatmul.msk.bf16.vlgmr.msrb.gmra.mxu3 %vm453_vm2, %v402_v34 }
  0x5d   : > { %1595 = vmatmul.msk.bf16.gmra.mxu0 %vm453_vm2, %v1637_v35  ;;  %1625 = vmatmul.msk.bf16.vlgmr.msra.gmra.mxu2 %vm453_vm2, %v402_v34 }
  0x5e   : > { %1603 = vmatmul.msk.bf16.gmra.mxu1 %vm453_vm2, %v1637_v35 }
  0x60   : > { %1626 = vmatmul.msk.bf16.vlgmr.msra.gmra.mxu3 %vm453_vm2, %v402_v34 }
  0x9a   : > { %v497_v37 = vpop.f32.mrf.mxu0 }
  0x9b   : > { %v546_v36 = vpop.f32.mrf.mxu1 }
  0xa0   : > { %v2060_v38 = vpop.f32.mrf.mxu2 }
  0xa2   : > { %v2064_v41 = vpop.f32.mrf.mxu0 }
  0xa3   : > { %v2062_v39 = vpop.f32.mrf.mxu3  ;;  %v548_v40 = vpop.f32.mrf.mxu1 }
  0xa8   : > { %v2066_v42 = vpop.f32.mrf.mxu2 }
  0xa9   : > { %2699 = vst [vmem:[#allocation5_spill] sm:$0xff] %v2066_v42 }
  0xaa   : > { %v2074_v46 = vpop.f32.mrf.mxu0 }
  0xab   : > { %v2068_v43 = vpop.f32.mrf.mxu3  ;;  %v2070_v44 = vpop.f32.mrf.mxu1 }
  0xb0   : > { %v2072_v45 = vpop.f32.mrf.mxu2 }
  0xb1   : > { %2700 = vst [vmem:[#allocation6_spill] sm:$0xff] %v2072_v45 }
  0xb2   : > { %v2084_v51 = vpop.f32.mrf.mxu0 }
  0xb3   : > { %v2076_v47 = vpop.f32.mrf.mxu3  ;;  %v2078_v48 = vpop.f32.mrf.mxu1 }
  0xb8   : > { %v2080_v49 = vpop.f32.mrf.mxu2 }
  0xb9   : > { %2701 = vst [vmem:[#allocation7_spill] sm:$0xff] %v2080_v49 }
  0xba   : > { %v2094_v56 = vpop.f32.mrf.mxu0 }
  0xbb   : > { %v2082_v50 = vpop.f32.mrf.mxu3  ;;  %v2086_v52 = vpop.f32.mrf.mxu1 }
  0xc0   : > { %v2088_v53 = vpop.f32.mrf.mxu2 }
  0xc1   : > { %2702 = vst [vmem:[#allocation8_spill] sm:$0xff] %v2088_v53 }
  0xc2   : > { %v2103_v63 = vpop.f32.mrf.mxu0 }
  0xc3   : > { %v2090_v54 = vpop.f32.mrf.mxu3  ;;  %v2092_v55 = vpop.f32.mrf.mxu1 }
  0xc8   : > { %v2096_v57 = vpop.f32.mrf.mxu2 }
  0xc9   : > { %2703 = vst [vmem:[#allocation9_spill] sm:$0xff] %v2096_v57 }
  0xca   : > { %v2125_v17 = vpop.f32.mrf.mxu0 }
  0xcb   : > { %v2098_v58 = vpop.f32.mrf.mxu3  ;;  %v561_v59 = vpop.f32.mrf.mxu1 }
  0xd0   : > { %v614_v0 = vpop.f32.mrf.mxu2 }
  0xd1   : > { %v637_v2 = vsub.f32 %v614_v0, %v633_v61 }
  0xd3   : > { %v627_v1 = vpop.f32.mrf.mxu3  ;;  %v563_v4 = vpop.f32.mrf.mxu1 }
  0xd4   : > { %v638_v3 = vsub.f32 %v627_v1, %v634_v62  ;;  %v2149_v1 = vpop.f32.mrf.mxu0 }
  0xd6   : > { %v641_v5 = vrot.slane %v638_v3, 7 }
  0xd8   : > { %v2106_v6 = vsel %vm642_vm3, %v637_v2, %v641_v5  ;;  %v2109_v7 = vsel %vm650_vm4, %v637_v2, %v641_v5  ;;  %v2112_v8 = vsel %vm653_vm5, %v637_v2, %v641_v5  ;;  %v2115_v9 = vsel %vm644_vm6, %v637_v2, %v641_v5  ;;  %v616_v13 = vpop.f32.mrf.mxu2 }
  0xd9   : > { %v2685_v10 = vperm.slane %v2106_v6, 0  ;;  %v666_v11 = vperm.slane %v2106_v6, 1  ;;  %v652_v12 = vrot.slane %v2109_v7, 3  ;;  %v2121_v14 = vsel %vm647_vm7, %v637_v2, %v641_v5 }
  0xda   : > { %v657_v15 = vsel %vm656_vm8, %v637_v2, %v641_v5  ;;  %v660_v16 = vsel %vm659_vm9, %v637_v2, %v641_v5  ;;  %v655_v29 = vrot.slane %v2112_v8, 4  ;;  %v663_v30 = vsel %vm662_vm10, %v641_v5, %v637_v2 }
  0xdb   : > { %v2129_v18 = vsub.f32 %v497_v37, %v2685_v10  ;;  %v698_v19 = vsub.f32 %v546_v36, %v666_v11  ;;  %v2131_v20 = vsub.f32 %v548_v40, %v666_v11  ;;  %v629_v21 = vpop.f32.mrf.mxu3  ;;  %v672_v22 = vperm.slane %v652_v12, 1  ;;  %v566_v24 = vpop.f32.mrf.mxu1 }
  0xdc   : > { %v674_v40 = vperm.slane %v655_v29, 1  ;;  %v2686_v3 = vrot.slane %v2115_v9, 1  ;;  %v658_v11 = vrot.slane %v657_v15, 5 }
  0xdd   : > { %v745_v23 = vmax.f32 %v698_v19, %v2131_v20  ;;  %v2137_v26 = vsub.f32 %v561_v59, %v672_v22  ;;  %v2139_v27 = vsub.f32 %v563_v4, %v672_v22  ;;  %v2687_v22 = vrot.slane %v2121_v14, 2 }
  0xde   : > { %v2156_v21 = vsub.f32 %v566_v24, %v674_v40 }
  0xdf   : > { %v746_v28 = vrot.slane %v745_v23, 4  ;;  %v766_v31 = vmax.f32 %v2137_v26, %v2139_v27 }
  0xe0   : > { %v1018_v36 = vpop.f32.mrf.mxu2 }
  0xe1   : > { %v747_v34 = vmax.f32 %v745_v23, %v746_v28  ;;  %v767_v35 = vrot.slane %v766_v31, 4  ;;  %v2147_v61 = vsub.f32 %v1018_v36, %v1037_v32  ;;  %v661_v23 = vrot.slane %v660_v16, 6 }
  0xe2   : > { %v664_v32 = vrot.slane %v663_v30, 7  ;;  %v2178_v36 = vperm.slane %v658_v11, 0 }
  0xe3   : > { %v748_v37 = vrot.slane %v747_v34, 2  ;;  %v1031_v59 = vpop.f32.mrf.mxu3  ;;  %v768_v60 = vmax.f32 %v766_v31, %v767_v35  ;;  %v568_v2 = vpop.f32.mrf.mxu1  ;;  %v668_v35 = vperm.slane %v2686_v3, 1 }
  0xe4   : > { %v1042_v62 = vsub.f32 %v1031_v59, %v1038_v33  ;;  %v2154_v7 = vsub.f32 %v568_v2, %v674_v40  ;;  %v2183_v2 = vperm.slane %v652_v12, 0  ;;  %v2187_v10 = vperm.slane %v664_v32, 0  ;;  %v2194_v12 = vpop.f32.mrf.mxu0 }
  0xe5   : > { %v749_v0 = vmax.f32 %v747_v34, %v748_v37  ;;  %v769_v4 = vrot.slane %v768_v60, 2  ;;  %v680_v3 = vperm.slane %v664_v32, 1 }
  0xe6   : > { %v2152_v5 = vrot.slane %v1042_v62, 7  ;;  %v773_v16 = vmax.f32 %v2156_v21, %v2154_v7  ;;  %v2181_v62 = vperm.slane %v661_v23, 0  ;;  %2705 = vst [vmem:[#allocation11_spill] sm:$0xff] %v2187_v10 }
  0xe7   : > { %v750_v13 = vrot.slane %v749_v0, 1  ;;  %v770_v25 = vmax.f32 %v768_v60, %v769_v4  ;;  %v676_v60 = vperm.slane %v658_v11, 1  ;;  %v670_v4 = vperm.slane %v2687_v22, 1 }
  0xe8   : > { %v2162_v28 = vsel %vm642_vm3, %v2147_v61, %v2152_v5  ;;  %v2167_v31 = vsel %vm650_vm4, %v2147_v61, %v2152_v5  ;;  %v2172_v15 = vsel %vm653_vm5, %v2147_v61, %v2152_v5  ;;  %v1020_v34 = vpop.f32.mrf.mxu2  ;;  %2704 = vst [vmem:[#allocation10_spill] sm:$0xff] %v2181_v62  ;;  %v2192_v11 = vsub.f32 %v2070_v44, %v668_v35 }
  0xe9   : > { %v751_v24 = vmax.f32 %v749_v0, %v750_v13  ;;  %v771_v33 = vrot.slane %v770_v25, 1  ;;  %v774_v0 = vrot.slane %v773_v16, 4  ;;  %v678_v34 = vperm.slane %v661_v23, 1 }
  0xeb   : > { %v801_v37 = vsub.f32 %v698_v19, %v751_v24  ;;  %v802_v40 = vsub.f32 %v2131_v20, %v751_v24  ;;  %v1033_v59 = vpop.f32.mrf.mxu3  ;;  %v772_v30 = vmax.f32 %v770_v25, %v771_v33  ;;  %v775_v24 = vmax.f32 %v773_v16, %v774_v0 }
  0xec   : > { %v2199_v33 = vsub.f32 %v2068_v43, %v676_v60  ;;  %v2207_v44 = vsub.f32 %v2076_v47, %v678_v34  ;;  %v2212_v59 = vsub.f32 %v2082_v50, %v678_v34  ;;  %v2222_v47 = vsub.f32 %v2086_v52, %v670_v4 }
  0xed   : > { %v817_v13 = vmul.f32 1.442695, %v801_v37  ;;  %v807_v19 = vsub.f32 %v2137_v26, %v772_v30  ;;  %v808_v20 = vsub.f32 %v2139_v27, %v772_v30  ;;  %v819_v32 = vmul.f32 1.442695, %v802_v40 }
  0xee   : > { %v776_v37 = vrot.slane %v775_v24, 2  ;;  %v2204_v27 = vsub.f32 %v2078_v48, %v668_v35  ;;  %v2217_v40 = vsub.f32 %v2090_v54, %v680_v3  ;;  %v2225_v35 = vsub.f32 %v2092_v55, %v670_v4 }
  0xef   : > { %1705 = vpow2.f32 %v817_v13  ;;  %v829_v26 = vmul.f32 1.442695, %v807_v19  ;;  %v831_v30 = vmul.f32 1.442695, %v808_v20  ;;  %v2228_v50 = vsub.f32 %v2062_v39, %v676_v60  ;;  %v519_v20 = vpop.f32.mrf.mxu0 }
  0xf0   : > { %v777_v0 = vmax.f32 %v775_v24, %v776_v37  ;;  %v2231_v13 = vsub.f32 %v2098_v58, %v680_v3  ;;  %1707 = vpow2.f32 %v819_v32  ;;  %v2237_v54 = vperm.slane %v655_v29, 0 }
  0xf1   : > { %1709 = vpow2.f32 %v829_v26  ;;  %v709_v52 = vsub.f32 %v2125_v17, %v2183_v2  ;;  %v729_v4 = vmax.f32 %v2129_v18, 0.0  ;;  %v752_v39 = vmax.f32 %v2192_v11, %v2204_v27 }
  0xf2   : > { %1711 = vpow2.f32 %v831_v30  ;;  %v778_v55 = vrot.slane %v777_v0, 1  ;;  %v759_v58 = vmax.f32 %v2222_v47, %v2225_v35  ;;  %v780_v3 = vmax.f32 %v2228_v50, %v2199_v33 }
  0xf3   : > { %v787_v8 = vmax.f32 %v2207_v44, %v2212_v59  ;;  %v711_v29 = vsub.f32 %v2149_v1, %v2183_v2  ;;  %v794_v17 = vmax.f32 %v2217_v40, %v2231_v13  ;;  %v2706_v60 = vperm.slane %v2106_v6, 0 }
  0xf4   : > { %v753_v24 = vrot.slane %v752_v39, 4  ;;  %v760_v32 = vrot.slane %v759_v58, 4  ;;  %v781_v26 = vrot.slane %v780_v3, 4  ;;  %v735_v30 = vmax.f32 %v709_v52, 0.0 }
  0xf5   : > { %v2233_v34 = vpop.eup %1705  ;;  %v699_v19 = vsub.f32 %v2064_v41, %v2706_v60  ;;  %v713_v48 = vsub.f32 %v2194_v12, %v2237_v54  ;;  %v779_v1 = vmax.f32 %v777_v0, %v778_v55  ;;  %v736_v6 = vmax.f32 %v711_v29, 0.0 }
  0xf6   : > { %v849_v18 = vmul.f32 %v2233_v34, %v729_v4  ;;  %v2258_v37 = vpop.eup %1707  ;;  %v754_v43 = vmax.f32 %v752_v39, %v753_v24  ;;  %v761_v16 = vmax.f32 %v759_v58, %v760_v32  ;;  %v782_v23 = vmax.f32 %v780_v3, %v781_v26 }
  0xf7   : > { %v1710_v2 = vpop.eup %1709  ;;  %v788_v4 = vrot.slane %v787_v8, 4  ;;  %v715_v41 = vsub.f32 %v519_v20, %v2237_v54  ;;  %v2707_v60 = vrot.slane %v2115_v9, 1  ;;  %v795_v57 = vrot.slane %v794_v17, 4 }
  0xf8   : > { %v1712_v25 = vpop.eup %1711  ;;  %v730_v10 = vmax.f32 %v699_v19, 0.0  ;;  %v755_v52 = vrot.slane %v754_v43, 2  ;;  %v762_v53 = vrot.slane %v761_v16, 2  ;;  %v783_v49 = vrot.slane %v782_v23, 2 }
  0xf9   : > { %v2265_v22 = vperm.slane %v2707_v60, 0  ;;  %v809_v12 = vsub.f32 %v2156_v21, %v779_v1  ;;  %v810_v0 = vsub.f32 %v2154_v7, %v779_v1  ;;  %v789_v55 = vmax.f32 %v787_v8, %v788_v4 }
  0xfa   : > { %v796_v39 = vmax.f32 %v794_v17, %v795_v57  ;;  %v756_v58 = vmax.f32 %v754_v43, %v755_v52  ;;  %v763_v3 = vmax.f32 %v761_v16, %v762_v53  ;;  %v784_v29 = vmax.f32 %v782_v23, %v783_v49 }
  0xfb   : > { %v850_v54 = vmul.f32 %v2258_v37, %v730_v10  ;;  %v855_v20 = vmul.f32 %v1710_v2, %v735_v30  ;;  %v856_v9 = vmul.f32 %v1712_v25, %v736_v6  ;;  %v790_v24 = vrot.slane %v789_v55, 2 }
  0xfc   : > { %v797_v32 = vrot.slane %v796_v39, 2  ;;  %v757_v26 = vrot.slane %v756_v58, 1  ;;  %v764_v19 = vrot.slane %v763_v3, 1  ;;  %v785_v60 = vrot.slane %v784_v29, 1 }
  0xfd   : > { %v2270_v62 = vadd.f32 %v850_v54, %v849_v18  ;;  %v942_v45 = vadd.f32 %v1712_v25, %v1710_v2  ;;  %v833_v21 = vmul.f32 1.442695, %v809_v12  ;;  %v791_v42 = vmax.f32 %v789_v55, %v790_v24 }
  0xfe   : > { %v798_v7 = vmax.f32 %v796_v39, %v797_v32  ;;  %v758_v8 = vmax.f32 %v756_v58, %v757_v26  ;;  %v886_v57 = vadd.f32 %v856_v9, %v855_v20  ;;  %v737_v43 = vmax.f32 %v713_v48, 0.0 }
  0xff   : > { %v835_v53 = vmul.f32 1.442695, %v810_v0  ;;  %v765_v49 = vmax.f32 %v763_v3, %v764_v19  ;;  %v2708_v10 = vrot.slane %v2121_v14, 2  ;;  %v786_v16 = vmax.f32 %v784_v29, %v785_v60 }
 0x100   : > { %v792_v17 = vrot.slane %v791_v42, 1  ;;  %v799_v30 = vrot.slane %v798_v7, 1  ;;  %v943_v1 = vrot.slane %v942_v45, 4  ;;  %v738_v4 = vmax.f32 %v715_v41, 0.0 }
 0x101   : > { %v2274_v23 = vperm.slane %v2708_v10, 0  ;;  %1713 = vpow2.f32 %v833_v21  ;;  %v701_v25 = vsub.f32 %v2074_v46, %v2265_v22  ;;  %v803_v6 = vsub.f32 %v2192_v11, %v758_v8 }
 0x102   : > { %v793_v18 = vmax.f32 %v791_v42, %v792_v17  ;;  %v800_v2 = vmax.f32 %v798_v7, %v799_v30  ;;  %v804_v48 = vsub.f32 %v2204_v27, %v758_v8  ;;  %v887_v52 = vrot.slane %v886_v57, 4 }
 0x103   : > { %v1056_v14 = vrot.slane %v2167_v31, 3  ;;  %1715 = vpow2.f32 %v835_v53  ;;  %v805_v12 = vsub.f32 %v2222_v47, %v765_v49  ;;  %v811_v0 = vsub.f32 %v2228_v50, %v786_v16 }
 0x104   : > { %v812_v41 = vsub.f32 %v2199_v33, %v786_v16  ;;  %v813_v55 = vsub.f32 %v2207_v44, %v793_v18  ;;  %v814_v46 = vsub.f32 %v2212_v59, %v793_v18  ;;  %v1058_v42 = vrot.slane %v2172_v15, 4 }
 0x105   : > { %v806_v11 = vsub.f32 %v2225_v35, %v765_v49  ;;  %v815_v27 = vsub.f32 %v2217_v40, %v800_v2  ;;  %v816_v39 = vsub.f32 %v2231_v13, %v800_v2  ;;  %v944_v58 = vadd.f32 %v943_v1, %v942_v45 }
 0x106   : > { %v821_v3 = vmul.f32 1.442695, %v803_v6  ;;  %v823_v29 = vmul.f32 1.442695, %v804_v48  ;;  %v921_v47 = vadd.f32 %v2258_v37, %v2233_v34  ;;  %v888_v33 = vadd.f32 %v887_v52, %v886_v57 }
 0x107   : > { %v1714_v50 = vpop.eup %1713  ;;  %v1065_v44 = vperm.slane %v2162_v28, 0  ;;  %v703_v59 = vsub.f32 %v2084_v51, %v2265_v22  ;;  %v825_v54 = vmul.f32 1.442695, %v805_v12  ;;  %v1066_v35 = vperm.slane %v2162_v28, 1 }
 0x108   : > { %v2298_v40 = vperm.slane %v1056_v14, 1  ;;  %v705_v45 = vsub.f32 %v2094_v56, %v2274_v23  ;;  %v837_v13 = vmul.f32 1.442695, %v811_v0  ;;  %v2304_v34 = vperm.slane %v1058_v42, 1 }
 0x109   : > { %v1716_v20 = vpop.eup %1715  ;;  %v717_v37 = vsub.f32 %v2060_v38, %v2178_v36  ;;  %1717 = vpow2.f32 %v821_v3  ;;  %v827_v51 = vmul.f32 1.442695, %v806_v11  ;;  %v945_v22 = vrot.slane %v944_v58, 2  ;;  %v2711_v11 = vld [vmem:[#allocation6_spill] sm:$0xff]  ;;  %v2714_v3 = vld [vmem:[#allocation7_spill] sm:$0xff] }
 0x10a   : > { %1719 = vpow2.f32 %v823_v29  ;;  %v839_v9 = vmul.f32 1.442695, %v812_v41  ;;  %v922_v24 = vrot.slane %v921_v47, 4  ;;  %v889_v32 = vrot.slane %v888_v33, 2  ;;  %v2709_v41 = vld [vmem:[#allocation5_spill] sm:$0xff] }
 0x10b   : > { %1721 = vpow2.f32 %v825_v54  ;;  %v841_v26 = vmul.f32 1.442695, %v813_v55  ;;  %v2311_v56 = vsel %vm644_vm6, %v2147_v61, %v2152_v5  ;;  %v857_v19 = vmul.f32 %v1714_v50, %v737_v43 }
 0x10c   : > { %v858_v60 = vmul.f32 %v1716_v20, %v738_v4  ;;  %1723 = vpow2.f32 %v837_v13  ;;  %v843_v21 = vmul.f32 1.442695, %v814_v46  ;;  %v845_v38 = vmul.f32 1.442695, %v815_v27  ;;  %v2712_v27 = vld [vmem:[#allocation10_spill] sm:$0xff]  ;;  %v2717_v13 = vld [vmem:[#allocation11_spill] sm:$0xff] }
 0x10d   : > { %1725 = vpow2.f32 %v827_v51  ;;  %v2316_v7 = vsel %vm647_vm7, %v2147_v61, %v2152_v5  ;;  %v2321_v8 = vsel %vm656_vm8, %v2147_v61, %v2152_v5  ;;  %v707_v57 = vsub.f32 %v2103_v63, %v2274_v23  ;;  %v2719_v51 = vld [vmem:[#allocation9_spill] sm:$0xff] }
 0x10e   : > { %1727 = vpow2.f32 %v839_v9  ;;  %v847_v43 = vmul.f32 1.442695, %v816_v39  ;;  %v923_v53 = vadd.f32 %v922_v24, %v921_v47  ;;  %v731_v10 = vmax.f32 %v701_v25, 0.0 }
 0x10f   : > { %v1718_v49 = vpop.eup %1717  ;;  %v732_v16 = vmax.f32 %v703_v59, 0.0  ;;  %v739_v17 = vmax.f32 %v717_v37, 0.0  ;;  %1729 = vpow2.f32 %v841_v26  ;;  %v890_v1 = vadd.f32 %v889_v32, %v888_v33 }
 0x110   : > { %v1720_v30 = vpop.eup %1719  ;;  %v946_v4 = vadd.f32 %v945_v22, %v944_v58  ;;  %v949_v18 = vadd.f32 %v1716_v20, %v1714_v50  ;;  %1731 = vpow2.f32 %v843_v21  ;;  %v893_v6 = vadd.f32 %v858_v60, %v857_v19 }
 0x111   : > { %v1722_v2 = vpop.eup %1721  ;;  %1733 = vpow2.f32 %v845_v38  ;;  %v866_v48 = vrot.slane %v2270_v62, 4  ;;  %v2329_v63 = vsel %vm659_vm9, %v2147_v61, %v2152_v5  ;;  %v733_v25 = vmax.f32 %v705_v45, 0.0  ;;  %v2716_v45 = vld [vmem:[#allocation8_spill] sm:$0xff] }
 0x112   : > { %v1724_v23 = vpop.eup %1723  ;;  %v734_v52 = vmax.f32 %v707_v57, 0.0  ;;  %1735 = vpow2.f32 %v847_v43  ;;  %v924_v12 = vrot.slane %v923_v53, 2  ;;  %v2710_v55 = vsub.f32 %v2709_v41, %v2178_v36 }
 0x113   : > { %v1726_v0 = vpop.eup %1725  ;;  %v2713_v39 = vsub.f32 %v2711_v11, %v2712_v27  ;;  %v2715_v29 = vsub.f32 %v2714_v3, %v2712_v27  ;;  %v859_v50 = vmul.f32 %v1724_v23, %v739_v17  ;;  %v891_v59 = vrot.slane %v890_v1, 1 }
 0x114   : > { %v740_v46 = vmax.f32 %v2710_v55, 0.0  ;;  %v1728_v33 = vpop.eup %1727  ;;  %v947_v54 = vrot.slane %v946_v4, 1  ;;  %v2718_v20 = vsub.f32 %v2716_v45, %v2717_v13  ;;  %v2720_v36 = vsub.f32 %v2719_v51, %v2717_v13 }
 0x115   : > { %v741_v58 = vmax.f32 %v2713_v39, 0.0  ;;  %v742_v47 = vmax.f32 %v2715_v29, 0.0  ;;  %v1730_v9 = vpop.eup %1729  ;;  %v894_v24 = vrot.slane %v893_v6, 4  ;;  %v950_v32 = vrot.slane %v949_v18, 4 }
 0x116   : > { %v743_v37 = vmax.f32 %v2718_v20, 0.0  ;;  %v744_v22 = vmax.f32 %v2720_v36, 0.0  ;;  %v860_v26 = vmul.f32 %v1728_v33, %v740_v46  ;;  %v867_v19 = vadd.f32 %v866_v48, %v2270_v62  ;;  %v1732_v60 = vpop.eup %1731 }
 0x117   : > { %v851_v21 = vmul.f32 %v1718_v49, %v731_v10  ;;  %v861_v38 = vmul.f32 %v1730_v9, %v741_v58  ;;  %v925_v57 = vadd.f32 %v924_v12, %v923_v53  ;;  %v956_v43 = vadd.f32 %v1728_v33, %v1724_v23  ;;  %v1734_v17 = vpop.eup %1733 }
 0x118   : > { %v852_v41 = vmul.f32 %v1720_v30, %v732_v16  ;;  %v862_v55 = vmul.f32 %v1732_v60, %v742_v47  ;;  %v900_v11 = vadd.f32 %v860_v26, %v859_v50  ;;  %v928_v27 = vadd.f32 %v1720_v30, %v1718_v49  ;;  %v1736_v39 = vpop.eup %1735 }
 0x119   : > { %v853_v3 = vmul.f32 %v1722_v2, %v733_v25  ;;  %v854_v29 = vmul.f32 %v1726_v0, %v734_v52  ;;  %v863_v45 = vmul.f32 %v1734_v17, %v743_v37  ;;  %v957_v13 = vrot.slane %v956_v43, 4 }
 0x11a   : > { %v951_v20 = vadd.f32 %v950_v32, %v949_v18  ;;  %v864_v51 = vmul.f32 %v1736_v39, %v744_v22  ;;  %v901_v46 = vrot.slane %v900_v11, 4  ;;  %v907_v36 = vadd.f32 %v862_v55, %v861_v38 }
 0x11b   : > { %v895_v62 = vadd.f32 %v894_v24, %v893_v6  ;;  %v868_v48 = vrot.slane %v867_v19, 2  ;;  %v926_v10 = vrot.slane %v925_v57, 1  ;;  %v958_v58 = vadd.f32 %v957_v13, %v956_v43 }
 0x11c   : > { %v872_v53 = vadd.f32 %v852_v41, %v851_v21  ;;  %v902_v23 = vadd.f32 %v901_v46, %v900_v11  ;;  %v914_v12 = vadd.f32 %v864_v51, %v863_v45  ;;  %v929_v16 = vrot.slane %v928_v27, 4 }
 0x11d   : > { %v948_v47 = vadd.f32 %v947_v54, %v946_v4  ;;  %v879_v50 = vadd.f32 %v854_v29, %v853_v3  ;;  %v935_v49 = vadd.f32 %v1726_v0, %v1722_v2  ;;  %v959_v30 = vrot.slane %v958_v58, 2 }
 0x11e   : > { %v2347_v25 = vadd.f32 %v891_v59, %v890_v1  ;;  %v952_v52 = vrot.slane %v951_v20, 2  ;;  %v908_v33 = vrot.slane %v907_v36, 4  ;;  %v915_v18 = vrot.slane %v914_v12, 4 }
 0x11f   : > { %v896_v37 = vrot.slane %v895_v62, 2  ;;  %v869_v22 = vadd.f32 %v868_v48, %v867_v19  ;;  %v927_v32 = vadd.f32 %v926_v10, %v925_v57  ;;  %v960_v6 = vadd.f32 %v959_v30, %v958_v58 }
 0x120   : > { %2721 = vst [vmem:[#allocation5_spill] sm:$0xff] %v2347_v25  ;;  %v873_v24 = vrot.slane %v872_v53, 4  ;;  %v903_v26 = vrot.slane %v902_v23, 2  ;;  %v930_v38 = vadd.f32 %v929_v16, %v928_v27  ;;  %v963_v21 = vadd.f32 %v1732_v60, %v1730_v9 }
 0x121   : > { %v880_v43 = vrot.slane %v879_v50, 4  ;;  %v936_v41 = vrot.slane %v935_v49, 4  ;;  %v961_v55 = vrot.slane %v960_v6, 1  ;;  %v970_v4 = vadd.f32 %v1736_v39, %v1734_v17 }
 0x122   : > { %v953_v54 = vadd.f32 %v952_v52, %v951_v20  ;;  %v909_v2 = vadd.f32 %v908_v33, %v907_v36  ;;  %v916_v0 = vadd.f32 %v915_v18, %v914_v12  ;;  %v964_v1 = vrot.slane %v963_v21, 4 }
 0x123   : > { %v870_v59 = vrot.slane %v869_v22, 1  ;;  %v962_v11 = vadd.f32 %v961_v55, %v960_v6  ;;  %v971_v3 = vrot.slane %v970_v4, 4  ;;  %1737 = vrcp.f32 %v927_v32 }
 0x124   : > { %v874_v29 = vadd.f32 %v873_v24, %v872_v53  ;;  %v904_v19 = vadd.f32 %v903_v26, %v902_v23  ;;  %v931_v57 = vrot.slane %v930_v38, 2  ;;  %v965_v45 = vadd.f32 %v964_v1, %v963_v21 }
 0x125   : > { %v881_v13 = vadd.f32 %v880_v43, %v879_v50  ;;  %v937_v51 = vadd.f32 %v936_v41, %v935_v49  ;;  %v972_v27 = vadd.f32 %v971_v3, %v970_v4  ;;  %v2352_v9 = vsel %vm662_vm10, %v2152_v5, %v2147_v61 }
 0x126   : > { %1739 = vrcp.f32 %v948_v47  ;;  %v910_v60 = vrot.slane %v909_v2, 2  ;;  %v917_v17 = vrot.slane %v916_v0, 2  ;;  %v966_v39 = vrot.slane %v965_v45, 2 }
 0x127   : > { %v897_v20 = vadd.f32 %v896_v37, %v895_v62  ;;  %v954_v46 = vrot.slane %v953_v54, 1  ;;  %v973_v36 = vrot.slane %v972_v27, 2  ;;  %1741 = vrcp.f32 %v962_v11 }
 0x128   : > { %v871_v48 = vadd.f32 %v870_v59, %v869_v22  ;;  %v875_v10 = vrot.slane %v874_v29, 2  ;;  %v905_v58 = vrot.slane %v904_v19, 1  ;;  %v967_v53 = vadd.f32 %v966_v39, %v965_v45 }
 0x129   : > { %v1738_v23 = vpop.eup %1737  ;;  %v882_v12 = vrot.slane %v881_v13, 2  ;;  %v932_v16 = vadd.f32 %v931_v57, %v930_v38  ;;  %v938_v50 = vrot.slane %v937_v51, 2  ;;  %v974_v49 = vadd.f32 %v973_v36, %v972_v27  ;;  %v1046_v57 = vld [vmem:[%s2370_s24 + $0x18] sm:$0xff] }
 0x12a   : > { %v911_v61 = vadd.f32 %v910_v60, %v909_v2  ;;  %v918_v5 = vadd.f32 %v917_v17, %v916_v0  ;;  %v968_v47 = vrot.slane %v967_v53, 1  ;;  %v2354_v30 = vmul.f32 %v1738_v23, %v871_v48 }
 0x12b   : > { %v898_v52 = vrot.slane %v897_v20, 1  ;;  %v955_v62 = vadd.f32 %v954_v46, %v953_v54  ;;  %v975_v33 = vrot.slane %v974_v49, 1  ;;  %v1052_v18 = vrot.slane %v2311_v56, 1 }
 0x12c   : > { %2722 = vst [vmem:[#allocation6_spill] sm:$0xff] %v2354_v30  ;;  %v2358_v37 = vpop.eup %1739  ;;  %v2360_v22 = vadd.f32 %v875_v10, %v874_v29  ;;  %v906_v32 = vadd.f32 %v905_v58, %v904_v19  ;;  %v969_v6 = vadd.f32 %v968_v47, %v967_v53  ;;  %v1054_v24 = vrot.slane %v2316_v7, 2  ;;  %v1044_v19 = vld [vmem:[%s2370_s24 + $0x8] sm:$0xff] }
 0x12d   : > { %2723 = vst [vmem:[#allocation10_spill] sm:$0xff] %v2358_v37  ;;  %v1742_v26 = vpop.eup %1741  ;;  %v2363_v38 = vadd.f32 %v882_v12, %v881_v13  ;;  %v933_v21 = vrot.slane %v932_v16, 1  ;;  %v2365_v43 = vadd.f32 %v938_v50, %v937_v51  ;;  %v976_v41 = vadd.f32 %v975_v33, %v974_v49 }
 0x12e   : > { %v912_v56 = vrot.slane %v911_v61, 1  ;;  %v919_v55 = vrot.slane %v918_v5, 1  ;;  %1743 = vrcp.f32 %v969_v6  ;;  %v2372_v4 = vmul.f32 %v1742_v26, %v906_v32 }
 0x12f   : > { %1745 = vrcp.f32 %v976_v41  ;;  %v1060_v7 = vrot.slane %v2321_v8, 5  ;;  %v1062_v54 = vrot.slane %v2329_v63, 6  ;;  %v1064_v2 = vrot.slane %v2352_v9, 7 }
 0x130   : > { %2724 = vst [vmem:[#allocation7_spill] sm:$0xff] %v2372_v4  ;;  %v2377_v0 = vadd.f32 %v898_v52, %v897_v20  ;;  %1747 = vrcp.f32 %v955_v62  ;;  %v1068_v59 = vperm.slane %v1052_v18, 1  ;;  %v2381_v3 = vadd.f32 %v933_v21, %v932_v16  ;;  %v2423_v16 = vld [vmem:[%s2370_s24 + $0x10] sm:$0xff] }
 0x131   : > { %v1070_v45 = vperm.slane %v1054_v24, 1  ;;  %v913_v8 = vadd.f32 %v912_v56, %v911_v61  ;;  %v920_v13 = vadd.f32 %v919_v55, %v918_v5  ;;  %v2386_v63 = vperm.slane %v1052_v18, 0 }
 0x132   : > { %2725 = vst [vmem:[#allocation8_spill] sm:$0xff] %v2377_v0  ;;  %v2388_v51 = vperm.slane %v1054_v24, 0  ;;  %v2392_v27 = vperm.slane %v1056_v14, 0  ;;  %v1076_v9 = vperm.slane %v1060_v7, 1  ;;  %v1078_v60 = vperm.slane %v1062_v54, 1 }
 0x133   : > { %v1080_v17 = vperm.slane %v1064_v2, 1  ;;  %v2396_v20 = vsub.f32 %v1044_v19, %v1066_v35  ;;  %v2400_v46 = vsub.f32 %v1046_v57, %v1066_v35  ;;  %v2402_v36 = vsub.f32 %v1044_v19, %v1068_v59  ;;  %v2420_v35 = vld [vmem:[%s2370_s24] sm:$0xff] }
 0x134   : > { %v1744_v39 = vpop.eup %1743  ;;  %v2404_v48 = vsub.f32 %v1046_v57, %v1068_v59  ;;  %v2408_v10 = vsub.f32 %v1044_v19, %v1070_v45  ;;  %v2410_v58 = vsub.f32 %v1046_v57, %v1070_v45  ;;  %v2413_v53 = vsub.f32 %v1044_v19, %v2298_v40 }
 0x135   : > { %v1746_v31 = vpop.eup %1745  ;;  %v2406_v14 = vmul.f32 %v1744_v39, %v913_v8  ;;  %v2426_v50 = vsub.f32 %v1046_v57, %v2298_v40  ;;  %v2429_v49 = vsub.f32 %v1044_v19, %v2304_v34  ;;  %v2432_v61 = vsub.f32 %v1046_v57, %v2304_v34 }
 0x136   : > { %v2415_v23 = vpop.eup %1747  ;;  %v2417_v12 = vmul.f32 %v1746_v31, %v920_v13  ;;  %v2434_v5 = vsub.f32 %v1044_v19, %v1076_v9  ;;  %v2436_v47 = vsub.f32 %v1046_v57, %v1076_v9  ;;  %v2438_v52 = vsub.f32 %v1044_v19, %v1078_v60 }
 0x137   : > { %2726 = vst [vmem:[#allocation11_spill] sm:$0xff] %v2406_v14  ;;  %v2440_v62 = vsub.f32 %v1046_v57, %v1078_v60  ;;  %v2444_v33 = vperm.slane %v1058_v42, 0  ;;  %v2446_v40 = vperm.slane %v1060_v7, 0  ;;  %v2448_v18 = vsub.f32 %v1044_v19, %v1080_v17 }
 0x138   : > { %2727 = vst [vmem:[#allocation9_spill] sm:$0xff] %v2415_v23  ;;  %v2450_v32 = vsub.f32 %v1046_v57, %v1080_v17  ;;  %v2452_v34 = vperm.slane %v1062_v54, 0  ;;  %v2454_v6 = vperm.slane %v1064_v2, 0  ;;  %v2459_v24 = vsub.f32 %v2420_v35, %v1065_v44 }
 0x139   : > { %2728 = vst [vmem:[#allocation12_spill] sm:$0xff] %v2417_v12  ;;  %v2464_v15 = vsub.f32 %v2423_v16, %v1065_v44  ;;  %v1145_v26 = vmax.f32 %v2396_v20, %v2400_v46  ;;  %v1152_v21 = vmax.f32 %v2402_v36, %v2404_v48  ;;  %v1159_v41 = vmax.f32 %v2408_v10, %v2410_v58 }
 0x13a   : > { %v1166_v56 = vmax.f32 %v2413_v53, %v2426_v50  ;;  %v1173_v28 = vmax.f32 %v2429_v49, %v2432_v61  ;;  %v1180_v44 = vmax.f32 %v2434_v5, %v2436_v47  ;;  %v1187_v55 = vmax.f32 %v2438_v52, %v2440_v62 }
 0x13b   : > { %v1146_v7 = vrot.slane %v1145_v26, 4  ;;  %v1153_v54 = vrot.slane %v1152_v21, 4  ;;  %v1160_v2 = vrot.slane %v1159_v41, 4  ;;  %v1194_v59 = vmax.f32 %v2448_v18, %v2450_v32 }
 0x13c   : > { %v1167_v19 = vrot.slane %v1166_v56, 4  ;;  %v1174_v57 = vrot.slane %v1173_v28, 4  ;;  %v1181_v45 = vrot.slane %v1180_v44, 4  ;;  %v1188_v8 = vrot.slane %v1187_v55, 4 }
 0x13d   : > { %v1147_v13 = vmax.f32 %v1145_v26, %v1146_v7  ;;  %v1154_v9 = vmax.f32 %v1152_v21, %v1153_v54  ;;  %v1161_v60 = vmax.f32 %v1159_v41, %v1160_v2  ;;  %v1195_v17 = vrot.slane %v1194_v59, 4 }
 0x13e   : > { %v1168_v39 = vmax.f32 %v1166_v56, %v1167_v19  ;;  %v1175_v31 = vmax.f32 %v1173_v28, %v1174_v57  ;;  %v1182_v11 = vmax.f32 %v1180_v44, %v1181_v45  ;;  %v1189_v1 = vmax.f32 %v1187_v55, %v1188_v8 }
 0x13f   : > { %v1148_v29 = vrot.slane %v1147_v13, 2  ;;  %v1155_v42 = vrot.slane %v1154_v9, 2  ;;  %v1162_v12 = vrot.slane %v1161_v60, 2  ;;  %v1196_v14 = vmax.f32 %v1194_v59, %v1195_v17 }
 0x140   : > { %v1169_v4 = vrot.slane %v1168_v39, 2  ;;  %v1176_v23 = vrot.slane %v1175_v31, 2  ;;  %v1183_v0 = vrot.slane %v1182_v11, 2  ;;  %v1190_v37 = vrot.slane %v1189_v1, 2 }
 0x141   : > { %v1103_v25 = vsub.f32 %v2423_v16, %v2386_v63  ;;  %v1149_v30 = vmax.f32 %v1147_v13, %v1148_v29  ;;  %v1156_v26 = vmax.f32 %v1154_v9, %v1155_v42  ;;  %v1163_v21 = vmax.f32 %v1161_v60, %v1162_v12 }
 0x142   : > { %v1170_v41 = vmax.f32 %v1168_v39, %v1169_v4  ;;  %v1177_v7 = vmax.f32 %v1175_v31, %v1176_v23  ;;  %v1184_v56 = vmax.f32 %v1182_v11, %v1183_v0  ;;  %v1197_v28 = vrot.slane %v1196_v14, 2 }
 0x143   : > { %v1105_v44 = vsub.f32 %v2420_v35, %v2388_v51  ;;  %v1150_v55 = vrot.slane %v1149_v30, 1  ;;  %v1157_v54 = vrot.slane %v1156_v26, 1  ;;  %v1164_v2 = vrot.slane %v1163_v21, 1 }
 0x144   : > { %v1107_v59 = vsub.f32 %v2423_v16, %v2388_v51  ;;  %v1109_v19 = vsub.f32 %v2420_v35, %v2392_v27  ;;  %v1171_v57 = vrot.slane %v1170_v41, 1  ;;  %v1191_v29 = vmax.f32 %v1189_v1, %v1190_v37 }
 0x145   : > { %v1151_v42 = vmax.f32 %v1149_v30, %v1150_v55  ;;  %v1158_v12 = vmax.f32 %v1156_v26, %v1157_v54  ;;  %v1165_v4 = vmax.f32 %v1163_v21, %v1164_v2  ;;  %v1178_v23 = vrot.slane %v1177_v7, 1 }
 0x146   : > { %v1111_v0 = vsub.f32 %v2423_v16, %v2392_v27  ;;  %v1113_v11 = vsub.f32 %v2420_v35, %v2444_v33  ;;  %v1185_v45 = vrot.slane %v1184_v56, 1  ;;  %v1198_v8 = vmax.f32 %v1196_v14, %v1197_v28 }
 0x147   : > { %v1172_v13 = vmax.f32 %v1170_v41, %v1171_v57  ;;  %v1201_v51 = vsub.f32 %v2396_v20, %v1151_v42  ;;  %v1202_v9 = vsub.f32 %v2400_v46, %v1151_v42  ;;  %v1203_v60 = vsub.f32 %v2402_v36, %v1158_v12 }
 0x148   : > { %v1115_v30 = vsub.f32 %v2423_v16, %v2444_v33  ;;  %v1117_v37 = vsub.f32 %v2420_v35, %v2446_v40  ;;  %v1119_v1 = vsub.f32 %v2423_v16, %v2446_v40  ;;  %v1204_v27 = vsub.f32 %v2404_v48, %v1158_v12 }
 0x149   : > { %v1121_v14 = vsub.f32 %v2420_v35, %v2452_v34  ;;  %v1179_v17 = vmax.f32 %v1177_v7, %v1178_v23  ;;  %v1192_v20 = vrot.slane %v1191_v29, 1  ;;  %v1205_v46 = vsub.f32 %v2408_v10, %v1165_v4 }
 0x14a   : > { %v1129_v36 = vmax.f32 %v2459_v24, 0.0  ;;  %v1186_v39 = vmax.f32 %v1184_v56, %v1185_v45  ;;  %v1199_v31 = vrot.slane %v1198_v8, 1  ;;  %v1206_v26 = vsub.f32 %v2410_v58, %v1165_v4 }
 0x14b   : > { %v1207_v21 = vsub.f32 %v2413_v53, %v1172_v13  ;;  %v1217_v41 = vmul.f32 1.442695, %v1201_v51  ;;  %v1219_v28 = vmul.f32 1.442695, %v1202_v9  ;;  %v1221_v55 = vmul.f32 1.442695, %v1203_v60 }
 0x14c   : > { %v1130_v48 = vmax.f32 %v2464_v15, 0.0  ;;  %v2729_v54 = vsub.f32 %v2420_v35, %v2386_v63  ;;  %v1208_v2 = vsub.f32 %v2426_v50, %v1172_v13  ;;  %v1223_v10 = vmul.f32 1.442695, %v1204_v27 }
 0x14d   : > { %v1193_v57 = vmax.f32 %v1191_v29, %v1192_v20  ;;  %v1209_v24 = vsub.f32 %v2429_v49, %v1179_v17  ;;  %1749 = vpow2.f32 %v1217_v41  ;;  %v1225_v56 = vmul.f32 1.442695, %v1205_v46 }
 0x14e   : > { %v1131_v7 = vmax.f32 %v2729_v54, 0.0  ;;  %v1132_v58 = vmax.f32 %v1103_v25, 0.0  ;;  %v1210_v53 = vsub.f32 %v2432_v61, %v1179_v17  ;;  %1751 = vpow2.f32 %v1219_v28 }
 0x14f   : > { %v1227_v42 = vmul.f32 1.442695, %v1206_v26  ;;  %v1200_v12 = vmax.f32 %v1198_v8, %v1199_v31  ;;  %v1211_v15 = vsub.f32 %v2434_v5, %v1186_v39  ;;  %1753 = vpow2.f32 %v1221_v55 }
 0x150   : > { %v1229_v4 = vmul.f32 1.442695, %v1207_v21  ;;  %v1133_v63 = vmax.f32 %v1105_v44, 0.0  ;;  %v1212_v23 = vsub.f32 %v2436_v47, %v1186_v39  ;;  %1755 = vpow2.f32 %v1223_v10 }
 0x151   : > { %v1231_v50 = vmul.f32 1.442695, %v1208_v2  ;;  %v1134_v29 = vmax.f32 %v1107_v59, 0.0  ;;  %v1213_v49 = vsub.f32 %v2438_v52, %v1193_v57  ;;  %1757 = vpow2.f32 %v1225_v56 }
 0x152   : > { %v1233_v45 = vmul.f32 1.442695, %v1209_v24  ;;  %v1135_v25 = vmax.f32 %v1109_v19, 0.0  ;;  %v1214_v61 = vsub.f32 %v2440_v62, %v1193_v57  ;;  %1759 = vpow2.f32 %v1227_v42 }
 0x153   : > { %v1235_v13 = vmul.f32 1.442695, %v1210_v53  ;;  %v1750_v8 = vpop.eup %1749  ;;  %v1136_v51 = vmax.f32 %v1111_v0, 0.0  ;;  %v1215_v5 = vsub.f32 %v2448_v18, %v1200_v12  ;;  %1761 = vpow2.f32 %v1229_v4 }
 0x154   : > { %v1237_v44 = vmul.f32 1.442695, %v1211_v15  ;;  %v1752_v9 = vpop.eup %1751  ;;  %v1216_v47 = vsub.f32 %v2450_v32, %v1200_v12  ;;  %1763 = vpow2.f32 %v1231_v50  ;;  %v1239_v59 = vmul.f32 1.442695, %v1212_v23 }
 0x155   : > { %v1249_v60 = vmul.f32 %v1750_v8, %v1129_v36  ;;  %v1754_v52 = vpop.eup %1753  ;;  %1765 = vpow2.f32 %v1233_v45  ;;  %v1241_v27 = vmul.f32 1.442695, %v1213_v49  ;;  %v1250_v19 = vmul.f32 %v1752_v9, %v1130_v48 }
 0x156   : > { %v1321_v17 = vadd.f32 %v1752_v9, %v1750_v8  ;;  %v1756_v62 = vpop.eup %1755  ;;  %v1137_v0 = vmax.f32 %v1113_v11, 0.0  ;;  %1767 = vpow2.f32 %v1235_v13  ;;  %v1243_v18 = vmul.f32 1.442695, %v1214_v61 }
 0x157   : > { %v1251_v20 = vmul.f32 %v1754_v52, %v1131_v7  ;;  %v2528_v46 = vpop.eup %1757  ;;  %1769 = vpow2.f32 %v1237_v44  ;;  %v1245_v32 = vmul.f32 1.442695, %v1215_v5  ;;  %v1252_v39 = vmul.f32 %v1756_v62, %v1132_v58 }
 0x158   : > { %v1265_v31 = vadd.f32 %v1250_v19, %v1249_v60  ;;  %v2530_v36 = vpop.eup %1759  ;;  %1771 = vpow2.f32 %v1239_v59  ;;  %v1247_v26 = vmul.f32 1.442695, %v1216_v47  ;;  %v1253_v21 = vmul.f32 %v2528_v46, %v1133_v63 }
 0x159   : > { %v1322_v41 = vrot.slane %v1321_v17, 4  ;;  %v2533_v28 = vpop.eup %1761  ;;  %1773 = vpow2.f32 %v1241_v27  ;;  %v1254_v11 = vmul.f32 %v2530_v36, %v1134_v29  ;;  %v1272_v48 = vadd.f32 %v1252_v39, %v1251_v20 }
 0x15a   : > { %v1266_v55 = vrot.slane %v1265_v31, 4  ;;  %v2536_v54 = vpop.eup %1763  ;;  %v1138_v7 = vmax.f32 %v1115_v30, 0.0  ;;  %1775 = vpow2.f32 %v1243_v18  ;;  %v1255_v2 = vmul.f32 %v2533_v28, %v1135_v25 }
 0x15b   : > { %v1328_v10 = vadd.f32 %v1756_v62, %v1754_v52  ;;  %v2542_v57 = vpop.eup %1765  ;;  %1777 = vpow2.f32 %v1245_v32  ;;  %v1256_v24 = vmul.f32 %v2536_v54, %v1136_v51  ;;  %v1273_v58 = vrot.slane %v1272_v48, 4 }
 0x15c   : > { %v1267_v56 = vadd.f32 %v1266_v55, %v1265_v31  ;;  %v2545_v53 = vpop.eup %1767  ;;  %v1123_v42 = vsub.f32 %v2423_v16, %v2452_v34  ;;  %1779 = vpow2.f32 %v1247_v26  ;;  %v1279_v12 = vadd.f32 %v1254_v11, %v1253_v21 }
 0x15d   : > { %v1323_v33 = vadd.f32 %v1322_v41, %v1321_v17  ;;  %v2549_v30 = vpop.eup %1769  ;;  %v1257_v15 = vmul.f32 %v2542_v57, %v1137_v0  ;;  %v1258_v4 = vmul.f32 %v2545_v53, %v1138_v7  ;;  %v1274_v63 = vadd.f32 %v1273_v58, %v1272_v48 }
 0x15e   : > { %v1286_v23 = vadd.f32 %v1256_v24, %v1255_v2  ;;  %v2553_v50 = vpop.eup %1771  ;;  %1781 = vrcp.f32 %v2381_v3  ;;  %v1125_v29 = vsub.f32 %v2420_v35, %v2454_v6  ;;  %v1268_v49 = vrot.slane %v1267_v56, 2 }
 0x15f   : > { %v1280_v45 = vrot.slane %v1279_v12, 4  ;;  %v2558_v25 = vpop.eup %1773  ;;  %v1127_v61 = vsub.f32 %v2423_v16, %v2454_v6  ;;  %v1275_v13 = vrot.slane %v1274_v63, 2  ;;  %v1329_v51 = vrot.slane %v1328_v10, 4 }
 0x160   : > { %v1287_v8 = vrot.slane %v1286_v23, 4  ;;  %v2562_v5 = vpop.eup %1775  ;;  %v1139_v44 = vmax.f32 %v1117_v37, 0.0  ;;  %v1140_v3 = vmax.f32 %v1119_v1, 0.0  ;;  %v1324_v47 = vrot.slane %v1323_v33, 2 }
 0x161   : > { %v1281_v9 = vadd.f32 %v1280_v45, %v1279_v12  ;;  %v2570_v59 = vpop.eup %1777  ;;  %v2730_v6 = vrot.slane %v2365_v43, 1  ;;  %v1141_v52 = vmax.f32 %v1121_v14, 0.0  ;;  %v1142_v27 = vmax.f32 %v1123_v42, 0.0 }
 0x162   : > { %v1293_v19 = vadd.f32 %v1258_v4, %v1257_v15  ;;  %v1780_v17 = vpop.eup %1779  ;;  %v1259_v37 = vmul.f32 %v2549_v30, %v1139_v44  ;;  %v1260_v16 = vmul.f32 %v2553_v50, %v1140_v3  ;;  %v1269_v40 = vadd.f32 %v1268_v49, %v1267_v56 }
 0x163   : > { %v941_v60 = vadd.f32 %v2730_v6, %v2365_v43  ;;  %v1288_v1 = vadd.f32 %v1287_v8, %v1286_v23  ;;  %v1143_v62 = vmax.f32 %v1125_v29, 0.0  ;;  %v1144_v0 = vmax.f32 %v1127_v61, 0.0 }
 0x164   : > { %v1276_v18 = vadd.f32 %v1275_v13, %v1274_v63  ;;  %v1330_v20 = vadd.f32 %v1329_v51, %v1328_v10  ;;  %v1782_v32 = vpop.eup %1781  ;;  %v1261_v43 = vmul.f32 %v2558_v25, %v1141_v52  ;;  %v1262_v39 = vmul.f32 %v2562_v5, %v1142_v27 }
 0x165   : > { %v1282_v35 = vrot.slane %v1281_v9, 2  ;;  %v1325_v34 = vadd.f32 %v1324_v47, %v1323_v33  ;;  %v2731_v14 = vrot.slane %v2360_v22, 1  ;;  %v1263_v26 = vmul.f32 %v2570_v59, %v1143_v62 }
 0x166   : > { %v1264_v21 = vmul.f32 %v1780_v17, %v1144_v0  ;;  %v1294_v41 = vrot.slane %v1293_v19, 4  ;;  %v2732_v11 = vrot.slane %v2363_v38, 1  ;;  %v1270_v48 = vrot.slane %v1269_v40, 1 }
 0x167   : > { %v878_v31 = vadd.f32 %v2731_v14, %v2360_v22  ;;  %v1289_v7 = vrot.slane %v1288_v1, 2  ;;  %v1300_v2 = vadd.f32 %v1260_v16, %v1259_v37  ;;  %1783 = vrcp.f32 %v941_v60 }
 0x168   : > { %v2589_v55 = vadd.f32 %v2732_v11, %v2363_v38  ;;  %v1277_v10 = vrot.slane %v1276_v18, 1  ;;  %v1331_v24 = vrot.slane %v1330_v20, 2  ;;  %v1335_v56 = vadd.f32 %v2530_v36, %v2528_v46 }
 0x169   : > { %v2593_v58 = vmul.f32 %v1782_v32, %v878_v31  ;;  %v1283_v22 = vadd.f32 %v1282_v35, %v1281_v9  ;;  %v1307_v42 = vadd.f32 %v1262_v39, %v1261_v43  ;;  %v1326_v12 = vrot.slane %v1325_v34, 1 }
 0x16a   : > { %v1295_v33 = vadd.f32 %v1294_v41, %v1293_v19  ;;  %v1314_v15 = vadd.f32 %v1264_v21, %v1263_v26  ;;  %v1332_v4 = vadd.f32 %v1331_v24, %v1330_v20  ;;  %v1336_v63 = vrot.slane %v1335_v56, 4 }
 0x16b   : > { %v2595_v38 = vadd.f32 %v1270_v48, %v1269_v40  ;;  %v2597_v23 = vadd.f32 %v1289_v7, %v1288_v1  ;;  %v1301_v29 = vrot.slane %v1300_v2, 4  ;;  %v1342_v49 = vadd.f32 %v2536_v54, %v2533_v28 }
 0x16c   : > { %v2601_v45 = vadd.f32 %v1277_v10, %v1276_v18  ;;  %v1333_v46 = vrot.slane %v1332_v4, 1  ;;  %v1337_v36 = vadd.f32 %v1336_v63, %v1335_v56  ;;  %v1349_v61 = vadd.f32 %v2545_v53, %v2542_v57 }
 0x16d   : > { %v1284_v13 = vrot.slane %v1283_v22, 1  ;;  %v1308_v8 = vrot.slane %v1307_v42, 4  ;;  %v1327_v51 = vadd.f32 %v1326_v12, %v1325_v34  ;;  %v1343_v44 = vrot.slane %v1342_v49, 4  ;;  %v1784_v3 = vpop.eup %1783 }
 0x16e   : > { %v1296_v9 = vrot.slane %v1295_v33, 2  ;;  %v1315_v47 = vrot.slane %v1314_v15, 4  ;;  %v1338_v6 = vrot.slane %v1337_v36, 2  ;;  %v1350_v60 = vrot.slane %v1349_v61, 4 }
 0x16f   : > { %v1291_v52 = vrot.slane %v2597_v23, 1  ;;  %v1302_v27 = vadd.f32 %v1301_v29, %v1300_v2  ;;  %v1344_v28 = vadd.f32 %v1343_v44, %v1342_v49  ;;  %v1356_v54 = vadd.f32 %v2553_v50, %v2549_v30  ;;  %v2733_v44 = vld [vmem:[#allocation6_spill] sm:$0xff] }
 0x170   : > { %v1334_v19 = vadd.f32 %v1333_v46, %v1332_v4  ;;  %v1339_v37 = vadd.f32 %v1338_v6, %v1337_v36  ;;  %v1351_v16 = vadd.f32 %v1350_v60, %v1349_v61  ;;  %v1363_v57 = vadd.f32 %v2562_v5, %v2558_v25 }
 0x171   : > { %v1309_v53 = vadd.f32 %v1308_v8, %v1307_v42  ;;  %v1345_v40 = vrot.slane %v1344_v28, 2  ;;  %v1357_v1 = vrot.slane %v1356_v54, 4  ;;  %v1370_v62 = vadd.f32 %v1780_v17, %v2570_v59 }
 0x172   : > { %v1316_v0 = vadd.f32 %v1315_v47, %v1314_v15  ;;  %v1340_v18 = vrot.slane %v1339_v37, 1  ;;  %v1352_v20 = vrot.slane %v1351_v16, 2  ;;  %v1364_v32 = vrot.slane %v1363_v57, 4 }
 0x173   : > { %v1346_v43 = vadd.f32 %v1345_v40, %v1344_v28  ;;  %v1358_v39 = vadd.f32 %v1357_v1, %v1356_v54  ;;  %v1371_v35 = vrot.slane %v1370_v62, 4  ;;  %1785 = vrcp.f32 %v1327_v51 }
 0x174   : > { %v1341_v30 = vadd.f32 %v1340_v18, %v1339_v37  ;;  %v1353_v50 = vadd.f32 %v1352_v20, %v1351_v16  ;;  %v1365_v34 = vadd.f32 %v1364_v32, %v1363_v57  ;;  %1787 = vrcp.f32 %v1334_v19  ;;  %v2734_v37 = vld [vmem:[#allocation5_spill] sm:$0xff]  ;;  %v2735_v16 = vld [vmem:[#allocation10_spill] sm:$0xff] }
 0x175   : > { %v1297_v14 = vadd.f32 %v1296_v9, %v1295_v33  ;;  %v1347_v31 = vrot.slane %v1346_v43, 1  ;;  %v1359_v25 = vrot.slane %v1358_v39, 2  ;;  %v1372_v5 = vadd.f32 %v1371_v35, %v1370_v62 }
 0x176   : > { %v1303_v26 = vrot.slane %v1302_v27, 2  ;;  %v1354_v21 = vrot.slane %v1353_v50, 1  ;;  %v1366_v41 = vrot.slane %v1365_v34, 2  ;;  %1789 = vrcp.f32 %v1341_v30 }
 0x177   : > { %v1310_v59 = vrot.slane %v1309_v53, 2  ;;  %v1348_v17 = vadd.f32 %v1347_v31, %v1346_v43  ;;  %v1360_v11 = vadd.f32 %v1359_v25, %v1358_v39  ;;  %v1373_v48 = vrot.slane %v1372_v5, 2 }
 0x178   : > { %v1285_v7 = vadd.f32 %v1284_v13, %v1283_v22  ;;  %v1317_v2 = vrot.slane %v1316_v0, 2  ;;  %v1355_v10 = vadd.f32 %v1354_v21, %v1353_v50  ;;  %v1367_v24 = vadd.f32 %v1366_v41, %v1365_v34  ;;  %v2739_v21 = vld [vmem:[#allocation11_spill] sm:$0xff] }
 0x179   : > { %v1786_v56 = vpop.eup %1785  ;;  %v1298_v42 = vrot.slane %v1297_v14, 1  ;;  %v1361_v12 = vrot.slane %v1360_v11, 1  ;;  %v1374_v15 = vadd.f32 %v1373_v48, %v1372_v5  ;;  %1791 = vrcp.f32 %v1348_v17  ;;  %v2738_v5 = vld [vmem:[#allocation7_spill] sm:$0xff] }
 0x17a   : > { %v1788_v33 = vpop.eup %1787  ;;  %v1304_v4 = vadd.f32 %v1303_v26, %v1302_v27  ;;  %v1368_v63 = vrot.slane %v1367_v24, 1  ;;  %1793 = vrcp.f32 %v1355_v10  ;;  %v1385_v29 = vmul.f32 %v1786_v56, %v2595_v38 }
 0x17b   : > { %v1311_v49 = vadd.f32 %v1310_v59, %v1309_v53  ;;  %v1362_v46 = vadd.f32 %v1361_v12, %v1360_v11  ;;  %v1375_v36 = vrot.slane %v1374_v15, 1  ;;  %v1386_v22 = vmul.f32 %v1788_v33, %v2601_v45  ;;  %v2740_v59 = vld [vmem:[#allocation12_spill] sm:$0xff] }
 0x17c   : > { %v1790_v61 = vpop.eup %1789  ;;  %v987_v13 = vmul.f32 %v1784_v3, %v2589_v55  ;;  %v1318_v8 = vadd.f32 %v1317_v2, %v1316_v0  ;;  %v1369_v51 = vadd.f32 %v1368_v63, %v1367_v24  ;;  %v1393_v9 = vadd.f32 %v1385_v29, %v2733_v44 }
 0x17d   : > { %v1376_v47 = vadd.f32 %v1375_v36, %v1374_v15  ;;  %1795 = vrcp.f32 %v1362_v46  ;;  %v1387_v6 = vmul.f32 %v1790_v61, %v1285_v7  ;;  %v1394_v38 = vadd.f32 %v1386_v22, %v2593_v58 }
 0x17e   : > { %v1292_v60 = vadd.f32 %v1291_v52, %v2597_v23  ;;  %v1299_v45 = vadd.f32 %v1298_v42, %v1297_v14  ;;  %v1305_v27 = vrot.slane %v1304_v4, 1  ;;  %1797 = vrcp.f32 %v1369_v51  ;;  %v2736_v23 = vld [vmem:[#allocation8_spill] sm:$0xff]  ;;  %v2737_v52 = vld [vmem:[#allocation9_spill] sm:$0xff] }
 0x17f   : > { %v1792_v55 = vpop.eup %1791  ;;  %v1312_v3 = vrot.slane %v1311_v49, 1  ;;  %1799 = vrcp.f32 %v1376_v47  ;;  %v1395_v28 = vadd.f32 %v1387_v6, %v987_v13  ;;  %v1409_v54 = vsel %vm644_vm6, %v1394_v38, %v1393_v9 }
 0x180   : > { %v1794_v19 = vpop.eup %1793  ;;  %v988_v58 = vmul.f32 %v2735_v16, %v2734_v37  ;;  %v1319_v57 = vrot.slane %v1318_v8, 1  ;;  %v1388_v53 = vmul.f32 %v1792_v55, %v1292_v60  ;;  %v989_v40 = vmul.f32 %v2737_v52, %v2736_v23 }
 0x181   : > { %v1389_v1 = vmul.f32 %v1794_v19, %v1299_v45  ;;  %v1410_v62 = vsel %vm647_vm7, %v1395_v28, %v1409_v54  ;;  %v1306_v0 = vadd.f32 %v1305_v27, %v1304_v4  ;;  %v1313_v32 = vadd.f32 %v1312_v3, %v1311_v49 }
 0x182   : > { %v1396_v18 = vadd.f32 %v1388_v53, %v988_v58  ;;  %v1320_v35 = vadd.f32 %v1319_v57, %v1318_v8 }
 0x183   : > { %v1796_v20 = vpop.eup %1795  ;;  %v1397_v43 = vadd.f32 %v1389_v1, %v989_v40 }
 0x184   : > { %v1798_v39 = vpop.eup %1797  ;;  %v1390_v30 = vmul.f32 %v1796_v20, %v1306_v0  ;;  %v1411_v50 = vsel %vm650_vm4, %v1396_v18, %v1410_v62 }
 0x185   : > { %v1800_v34 = vpop.eup %1799  ;;  %v1391_v14 = vmul.f32 %v1798_v39, %v1313_v32  ;;  %v1412_v31 = vsel %vm653_vm5, %v1397_v43, %v1411_v50 }
 0x186   : > { %v1392_v25 = vmul.f32 %v1800_v34, %v1320_v35  ;;  %v1398_v26 = vadd.f32 %v1390_v30, %v2738_v5 }
 0x187   : > { %v1399_v41 = vadd.f32 %v1391_v14, %v2739_v21 }
 0x188   : > { %v1400_v17 = vadd.f32 %v1392_v25, %v2740_v59  ;;  %v1413_v11 = vsel %vm656_vm8, %v1398_v26, %v1412_v31 }
 0x189   : > { %v1414_v48 = vsel %vm659_vm9, %v1399_v41, %v1413_v11 }
 0x18a   : > { %v1416_v7 = vsel %vm1415_vm11, %v1400_v17, %v1414_v48 }
 0x18b   : > { %1418 = vst [vmem:[%s361_s30] sm:$0xff] %v1416_v7 }
 0x18c   : > { %1828 = shalt.err (!%p1825_p5)
}
 0x18d   : > { %1649 = dma.vmem_to_hbm [thread:$0]  (%p1967_p4), %s1434_s20, 128, %s1436_s21, %s1420_s22  }
 0x18e PF: > { %p1655_p6 = scmp.ge.s32.totalorder %s1879_s10, 2  ;;  %s1447_s25 = sand.u32 1, %s1859_s27  }
 0x18f   : > { %s1448_s16 = scalar_lea.sflag [#allocation3], %s1447_s25 }
 0x190   : > { %p1652_p7 = pnand %p1655_p6, %p1974_p8 }
 0x192   : > { %p1653_p9 = pneg %p1652_p7 }
 0x194   : > { %1854 = dma.done.wait (%p1653_p9), %s1448_s16, 128  }
 0x195   : > { %1856 = vsyncadd (%p1653_p9), %s1448_s16, 4294967168  ;;  %s21_s10 = sadd.s32 1, %s1879_s10   ;;  %s2741_s27 = smov %s1863_s28 }
 0x196   : > { %p18_p10 = scmp.ge.s32.totalorder %s21_s10, 4   ;;  %s2742_s28 = smov %s1867_s29 }
 0x197   : > { %s2743_s29 = smov %s1980_s18  ;;  %s2744_s30 = smov %s1875_s9 }
 0x198   : > { %s2745_s9 = smov %s2747_s13  ;;  %20 = sbr.rel (!%p18_p10) target bundleno = 4 (0x4), region = 93 }
 0x19d   :  { %1454 = vsyncpa [#allocation3], 1 }
 0x19e   :  { %1456 = vsyncpa [#allocation3 + $0x1], 1 }

</bundles_post_ra>
